<compile_context>
chip_gen: v6e
topology: v6e:2x2x1
jax: 0.10.0
libtpu: 0.0.40
codegen_flags: <defaults>
</compile_context>

<pallas_src>
import jax
import jax.numpy as jnp
from jax.experimental import pallas as pl
from jax.experimental.pallas import tpu as pltpu


def _round_up(x, m):
    return (x + m - 1) // m * m


# ---------------------------------------------------------------------------
# Kernel 1: fused conv-as-GEMM + bias + ReLU + 2x2 max-pool
#   x_ref : (4, TM, Kp)  bf16  -- im2col patches for the 4 pool-window corners
#   w_ref : (Kp, Cp)     bf16  -- weights, K zero-padded, Cout padded to 128
#   b_ref : (1, Cp)      f32
#   o_ref : (TM, Cp)     bf16  -- pooled activations, lane-dense (Cp % 128 == 0)
# ---------------------------------------------------------------------------

def _conv_relu_pool_kernel(x_ref, w_ref, b_ref, o_ref):
    w = w_ref[...]
    m = None
    for c in range(4):  # static unroll over the 2x2 pool corners
        acc = jnp.dot(x_ref[c], w, preferred_element_type=jnp.float32)
        m = acc if m is None else jnp.maximum(m, acc)
    # Bias is identical across corners -> add once after the max; ReLU and
    # max-pool commute, so this matches pool(relu(conv + b)) exactly.
    o_ref[...] = jnp.maximum(m + b_ref[...], 0.0).astype(o_ref.dtype)


def conv_relu_pool(x, w, b):
    """Fused valid conv (stride 1) + bias + ReLU + 2x2/2 max-pool, NHWC.

    x: (N, H, W, Cin) bf16;  w: (Cout, Cin, kh, kw) f32;  b: (Cout,) f32
    returns (N, OH//2, OW//2, Cout) bf16.
    """
    N, H, W, Cin = x.shape
    Cout, Cin2, kh, kw = w.shape
    assert Cin == Cin2, (Cin, Cin2)
    OH, OW = H - kh + 1, W - kw + 1
    assert OH % 2 == 0 and OW % 2 == 0, (OH, OW)
    PH, PW = OH // 2, OW // 2

    # im2col (XLA layout glue): K index ordered (i, j, ci) to match the weight
    # reshape below.
    cols = [x[:, i:i + OH, j:j + OW, :] for i in range(kh) for j in range(kw)]
    patches = jnp.concatenate(cols, axis=-1)                   # (N, OH, OW, K)
    K = kh * kw * Cin
    Kp = _round_up(K, 8)            # sublane-aligned contraction dim
    Cp = _round_up(Cout, 128)       # lane-dense output channels
    patches = jnp.pad(patches, ((0, 0), (0, 0), (0, 0), (0, Kp - K)))
    # Corner-separated patches: the 2x2 max-pool becomes max over 4 GEMMs.
    corners = [patches[:, di::2, dj::2, :] for di in (0, 1) for dj in (0, 1)]
    xmat = jnp.stack(corners, axis=0).reshape(4, N * PH * PW, Kp)
    xmat = xmat.astype(jnp.bfloat16)

    wmat = w.transpose(2, 3, 1, 0).reshape(K, Cout)            # (K, Cout)
    wmat = jnp.pad(wmat, ((0, Kp - K), (0, Cp - Cout))).astype(jnp.bfloat16)
    bvec = jnp.pad(b, (0, Cp - Cout)).reshape(1, Cp).astype(jnp.float32)

    # M-tiling: whole pooled images per block, capped at <=512 rows so the
    # double-buffered working set stays well under v7x's 64 MiB VMEM.
    rows = PH * PW                       # pooled rows per image (mult. of 8)
    ipb = 1                              # images per block
    while ipb * 2 <= N and N % (ipb * 2) == 0 and rows * ipb * 2 <= 512:
        ipb *= 2
    TM = rows * ipb
    M = N * rows

    flops = 2 * 4 * M * Kp * Cp
    bytes_accessed = (xmat.size + wmat.size + M * Cp) * 2 + bvec.size * 4

    out = pl.pallas_call(
        _conv_relu_pool_kernel,
        out_shape=jax.ShapeDtypeStruct((M, Cp), jnp.bfloat16),
        grid=(M // TM,),
        in_specs=[
            pl.BlockSpec((4, TM, Kp), lambda m: (0, m, 0)),
            pl.BlockSpec((Kp, Cp), lambda m: (0, 0)),
            pl.BlockSpec((1, Cp), lambda m: (0, 0)),
        ],
        out_specs=pl.BlockSpec((TM, Cp), lambda m: (m, 0)),
        compiler_params=pltpu.CompilerParams(
            dimension_semantics=("parallel",)),
        cost_estimate=pl.CostEstimate(
            flops=flops, transcendentals=0, bytes_accessed=bytes_accessed),
    )(xmat, wmat, bvec)

    # Slice the zero-padded channels back off (cheap; keeps the next layer's K
    # from blowing up 4x).
    return out.reshape(N, PH, PW, Cp)[..., :Cout]


# ---------------------------------------------------------------------------
# Kernel 2: fused tail  --  conv3 (1x1 output spatial => plain GEMM) + ReLU,
# fc1 + ReLU, fc2 + ReLU, fc3.  All weights padded to 128-lane tiles; all
# intermediates stay in vregs.
# ---------------------------------------------------------------------------

def _tail_kernel(x_ref, w3_ref, b3_ref, w4_ref, b4_ref, w5_ref, b5_ref,
                 w6_ref, b6_ref, o_ref):
    def fc(h, w_ref, b_ref, relu):
        acc = jnp.dot(h.astype(w_ref.dtype), w_ref[...],
                      preferred_element_type=jnp.float32) + b_ref[...]
        return jnp.maximum(acc, 0.0) if relu else acc

    h = fc(x_ref[...], w3_ref, b3_ref, True)    # conv3 + ReLU   (N, 128)
    h = fc(h, w4_ref, b4_ref, True)             # fc1   + ReLU   (N, 128)
    h = fc(h, w5_ref, b5_ref, True)             # fc2   + ReLU   (N, 128)
    h = fc(h, w6_ref, b6_ref, False)            # fc3            (N, 128)
    o_ref[...] = h.astype(o_ref.dtype)


def fused_tail(x, params):
    """x: (N, 4, 4, 16) bf16 NHWC -> logits (N, 10) f32."""
    N = x.shape[0]
    xt = x.reshape(N, 4 * 4 * 16)               # NHWC flatten (h, w, c) order

    def pad_w(wmat, rows):
        r, c = wmat.shape
        return jnp.pad(wmat, ((0, rows - r), (0, 128 - c))).astype(jnp.bfloat16)

    def pad_b(bvec):
        return jnp.pad(bvec, (0, 128 - bvec.shape[0])).reshape(1, 128).astype(
            jnp.float32)

    # conv3 weight (Cout,Cin,kh,kw) -> (kh,kw,Cin,Cout) -> (256, 16), matching
    # the NHWC flatten order of xt.  fc weights are (out, in) -> transpose.
    w3 = pad_w(params["conv3_w"].transpose(2, 3, 1, 0).reshape(256, 16), 256)
    w4 = pad_w(params["fc1_w"].T, 128)
    w5 = pad_w(params["fc2_w"].T, 128)
    w6 = pad_w(params["fc3_w"].T, 128)
    b3, b4, b5, b6 = (pad_b(params[k]) for k in
                      ("conv3_b", "fc1_b", "fc2_b", "fc3_b"))

    w_shapes = [(256, 128), (1, 128), (128, 128), (1, 128),
                (128, 128), (1, 128), (128, 128), (1, 128)]
    out = pl.pallas_call(
        _tail_kernel,
        out_shape=jax.ShapeDtypeStruct((N, 128), jnp.float32),
        grid=(1,),
        in_specs=[pl.BlockSpec((N, 256), lambda i: (0, 0))]
                 + [pl.BlockSpec(s, lambda i: (0, 0)) for s in w_shapes],
        out_specs=pl.BlockSpec((N, 128), lambda i: (0, 0)),
    )(xt, w3, b3, w4, b4, w5, b5, w6, b6)
    return out[:, :10]


# ---------------------------------------------------------------------------
# Parameters (deterministic init, PyTorch default-like uniform(-1/sqrt(fan_in)))
# ---------------------------------------------------------------------------

def init_params(key):
    def uniform(key, shape, fan_in):
        bound = 1.0 / jnp.sqrt(jnp.float32(fan_in))
        return jax.random.uniform(key, shape, jnp.float32, -bound, bound)

    ks = jax.random.split(key, 12)
    p = {}
    p["conv1_w"] = uniform(ks[0], (32, 1, 5, 5), 1 * 5 * 5)
    p["conv1_b"] = uniform(ks[1], (32,), 1 * 5 * 5)
    p["conv2_w"] = uniform(ks[2], (16, 32, 5, 5), 32 * 5 * 5)
    p["conv2_b"] = uniform(ks[3], (16,), 32 * 5 * 5)
    p["conv3_w"] = uniform(ks[4], (16, 16, 4, 4), 16 * 4 * 4)
    p["conv3_b"] = uniform(ks[5], (16,), 16 * 4 * 4)
    p["fc1_w"] = uniform(ks[6], (120, 16), 16)
    p["fc1_b"] = uniform(ks[7], (120,), 16)
    p["fc2_w"] = uniform(ks[8], (84, 120), 120)
    p["fc2_b"] = uniform(ks[9], (84,), 120)
    p["fc3_w"] = uniform(ks[10], (10, 84), 84)
    p["fc3_b"] = uniform(ks[11], (10,), 84)
    return p


# ---------------------------------------------------------------------------
# Forward pass (matches Net.forward)
# ---------------------------------------------------------------------------

@jax.jit
def net_forward(params, x):
    # x: (N, 1, 28, 28) NCHW float32 (PyTorch layout).  Single transpose to
    # NHWC + bf16 cast; everything downstream stays NHWC / lane-dense.
    x = jnp.transpose(x, (0, 2, 3, 1)).astype(jnp.bfloat16)        # (N,28,28,1)
    x = conv_relu_pool(x, params["conv1_w"], params["conv1_b"])    # (N,12,12,32)
    x = conv_relu_pool(x, params["conv2_w"], params["conv2_b"])    # (N, 4, 4,16)
    return fused_tail(x, params)                                   # (N, 10) f32


if __name__ == "__main__":
    key = jax.random.PRNGKey(0)
    pkey, xkey = jax.random.split(key)
    params = init_params(pkey)
    # Input spatial size implied by fc1 = Linear(16*1*1, 120): 28x28, 1 channel.
    x = jax.random.normal(xkey, (2, 1, 28, 28), dtype=jnp.float32)
    out = net_forward(params, x)
    out = jax.block_until_ready(out)
    assert out.shape == (2, 10), out.shape
    assert bool(jnp.all(jnp.isfinite(out)))
    print("KERNEL_OK")
</pallas_src>

<mosaic_0001>
module attributes {stable_mosaic.version = 11 : i64} {
  func.func @_conv_relu_pool_kernel(%arg0: i32, %arg1: memref<4x288x32xbf16, #tpu.memory_space<vmem>>, %arg2: memref<32x128xbf16, #tpu.memory_space<vmem>>, %arg3: memref<1x128xf32, #tpu.memory_space<vmem>>, %arg4: memref<288x128xbf16, #tpu.memory_space<vmem>>) attributes {dimension_semantics = [#tpu.dimension_semantics<parallel>], iteration_bounds = array<i64: 1>, scalar_prefetch = 0 : i64, scratch_operands = 0 : i64, tpu.core_type = #tpu.core_type<tc>, window_params = [{transform_indices = @transform_0, window_bounds = array<i64: 4, 288, 32>}, {pipeline_mode = #tpu.pipeline_mode<synchronous>, transform_indices = @transform_1, window_bounds = array<i64: 32, 128>}, {pipeline_mode = #tpu.pipeline_mode<synchronous>, transform_indices = @transform_2, window_bounds = array<i64: 1, 128>}, {transform_indices = @transform_3, window_bounds = array<i64: 288, 128>}]} {
    %c0 = arith.constant 0 : index
    %c0_0 = arith.constant 0 : index
    %0 = vector.load %arg2[%c0, %c0_0] : memref<32x128xbf16, #tpu.memory_space<vmem>>, vector<32x128xbf16>
    %c0_1 = arith.constant 0 : index
    %c0_2 = arith.constant 0 : index
    %c0_3 = arith.constant 0 : index
    %1 = vector.load %arg1[%c0_1, %c0_2, %c0_3] : memref<4x288x32xbf16, #tpu.memory_space<vmem>>, vector<1x288x32xbf16>
    %2 = vector.shape_cast %1 : vector<1x288x32xbf16> to vector<288x32xbf16>
    %cst = arith.constant dense<0.000000e+00> : vector<288x128xf32>
    %3 = tpu.matmul %2, %0, %cst {dimension_numbers = #tpu.dot_dimension_numbers<[1], [0], [0], [1], [0, 0, 1, 1], [], []>} : vector<288x32xbf16>, vector<32x128xbf16>, vector<288x128xf32> -> vector<288x128xf32>
    %c1 = arith.constant 1 : index
    %c0_4 = arith.constant 0 : index
    %c0_5 = arith.constant 0 : index
    %4 = vector.load %arg1[%c1, %c0_4, %c0_5] : memref<4x288x32xbf16, #tpu.memory_space<vmem>>, vector<1x288x32xbf16>
    %5 = vector.shape_cast %4 : vector<1x288x32xbf16> to vector<288x32xbf16>
    %cst_6 = arith.constant dense<0.000000e+00> : vector<288x128xf32>
    %6 = tpu.matmul %5, %0, %cst_6 {dimension_numbers = #tpu.dot_dimension_numbers<[1], [0], [0], [1], [0, 0, 1, 1], [], []>} : vector<288x32xbf16>, vector<32x128xbf16>, vector<288x128xf32> -> vector<288x128xf32>
    %7 = arith.maximumf %3, %6 : vector<288x128xf32>
    %c2 = arith.constant 2 : index
    %c0_7 = arith.constant 0 : index
    %c0_8 = arith.constant 0 : index
    %8 = vector.load %arg1[%c2, %c0_7, %c0_8] : memref<4x288x32xbf16, #tpu.memory_space<vmem>>, vector<1x288x32xbf16>
    %9 = vector.shape_cast %8 : vector<1x288x32xbf16> to vector<288x32xbf16>
    %cst_9 = arith.constant dense<0.000000e+00> : vector<288x128xf32>
    %10 = tpu.matmul %9, %0, %cst_9 {dimension_numbers = #tpu.dot_dimension_numbers<[1], [0], [0], [1], [0, 0, 1, 1], [], []>} : vector<288x32xbf16>, vector<32x128xbf16>, vector<288x128xf32> -> vector<288x128xf32>
    %11 = arith.maximumf %7, %10 : vector<288x128xf32>
    %c3 = arith.constant 3 : index
    %c0_10 = arith.constant 0 : index
    %c0_11 = arith.constant 0 : index
    %12 = vector.load %arg1[%c3, %c0_10, %c0_11] : memref<4x288x32xbf16, #tpu.memory_space<vmem>>, vector<1x288x32xbf16>
    %13 = vector.shape_cast %12 : vector<1x288x32xbf16> to vector<288x32xbf16>
    %cst_12 = arith.constant dense<0.000000e+00> : vector<288x128xf32>
    %14 = tpu.matmul %13, %0, %cst_12 {dimension_numbers = #tpu.dot_dimension_numbers<[1], [0], [0], [1], [0, 0, 1, 1], [], []>} : vector<288x32xbf16>, vector<32x128xbf16>, vector<288x128xf32> -> vector<288x128xf32>
    %15 = arith.maximumf %11, %14 : vector<288x128xf32>
    %c0_13 = arith.constant 0 : index
    %c0_14 = arith.constant 0 : index
    %16 = vector.load %arg3[%c0_13, %c0_14] : memref<1x128xf32, #tpu.memory_space<vmem>>, vector<1x128xf32>
    %17 = vector.broadcast %16 : vector<1x128xf32> to vector<288x128xf32>
    %18 = arith.addf %15, %17 : vector<288x128xf32>
    %cst_15 = arith.constant 0.000000e+00 : f32
    %19 = vector.broadcast %cst_15 : f32 to vector<288x128xf32>
    %20 = arith.maximumf %18, %19 : vector<288x128xf32>
    %21 = arith.truncf %20 : vector<288x128xf32> to vector<288x128xbf16>
    %c0_16 = arith.constant 0 : index
    %c0_17 = arith.constant 0 : index
    %22 = vector.load %arg4[%c0_16, %c0_17] : memref<288x128xbf16, #tpu.memory_space<vmem>>, vector<288x128xbf16>
    tpu.vector_store %arg4[%c0_16, %c0_17], %21 {strides = array<i32>} : memref<288x128xbf16, #tpu.memory_space<vmem>>, vector<288x128xbf16>,
    return
  }
  func.func @transform_0(%arg0: i32) -> (i32, i32, i32) {
    %c0_i32 = arith.constant 0 : i32
    %c0_i32_0 = arith.constant 0 : i32
    %c0_i32_1 = arith.constant 0 : i32
    return %c0_i32, %arg0, %c0_i32_0 : i32, i32, i32
  }
  func.func @transform_1(%arg0: i32) -> (i32, i32) {
    %c0_i32 = arith.constant 0 : i32
    %c0_i32_0 = arith.constant 0 : i32
    %c0_i32_1 = arith.constant 0 : i32
    return %c0_i32, %c0_i32_0 : i32, i32
  }
  func.func @transform_2(%arg0: i32) -> (i32, i32) {
    %c0_i32 = arith.constant 0 : i32
    %c0_i32_0 = arith.constant 0 : i32
    %c0_i32_1 = arith.constant 0 : i32
    return %c0_i32, %c0_i32_0 : i32, i32
  }
  func.func @transform_3(%arg0: i32) -> (i32, i32) {
    %c0_i32 = arith.constant 0 : i32
    %c0_i32_0 = arith.constant 0 : i32
    return %arg0, %c0_i32 : i32, i32
  }
}

module attributes {stable_mosaic.version = 11 : i64} {
  func.func @_conv_relu_pool_kernel(%arg0: i32, %arg1: memref<4x32x800xbf16, #tpu.memory_space<vmem>>, %arg2: memref<800x128xbf16, #tpu.memory_space<vmem>>, %arg3: memref<1x128xf32, #tpu.memory_space<vmem>>, %arg4: memref<32x128xbf16, #tpu.memory_space<vmem>>) attributes {dimension_semantics = [#tpu.dimension_semantics<parallel>], iteration_bounds = array<i64: 1>, scalar_prefetch = 0 : i64, scratch_operands = 0 : i64, tpu.core_type = #tpu.core_type<tc>, window_params = [{transform_indices = @transform_0, window_bounds = array<i64: 4, 32, 800>}, {pipeline_mode = #tpu.pipeline_mode<synchronous>, transform_indices = @transform_1, window_bounds = array<i64: 800, 128>}, {pipeline_mode = #tpu.pipeline_mode<synchronous>, transform_indices = @transform_2, window_bounds = array<i64: 1, 128>}, {transform_indices = @transform_3, window_bounds = array<i64: 32, 128>}]} {
    %c0 = arith.constant 0 : index
    %c0_0 = arith.constant 0 : index
    %0 = vector.load %arg2[%c0, %c0_0] : memref<800x128xbf16, #tpu.memory_space<vmem>>, vector<800x128xbf16>
    %c0_1 = arith.constant 0 : index
    %c0_2 = arith.constant 0 : index
    %c0_3 = arith.constant 0 : index
    %1 = vector.load %arg1[%c0_1, %c0_2, %c0_3] : memref<4x32x800xbf16, #tpu.memory_space<vmem>>, vector<1x32x800xbf16>
    %2 = vector.shape_cast %1 : vector<1x32x800xbf16> to vector<32x800xbf16>
    %cst = arith.constant dense<0.000000e+00> : vector<32x128xf32>
    %3 = tpu.matmul %2, %0, %cst {dimension_numbers = #tpu.dot_dimension_numbers<[1], [0], [0], [1], [0, 0, 1, 1], [], []>} : vector<32x800xbf16>, vector<800x128xbf16>, vector<32x128xf32> -> vector<32x128xf32>
    %c1 = arith.constant 1 : index
    %c0_4 = arith.constant 0 : index
    %c0_5 = arith.constant 0 : index
    %4 = vector.load %arg1[%c1, %c0_4, %c0_5] : memref<4x32x800xbf16, #tpu.memory_space<vmem>>, vector<1x32x800xbf16>
    %5 = vector.shape_cast %4 : vector<1x32x800xbf16> to vector<32x800xbf16>
    %cst_6 = arith.constant dense<0.000000e+00> : vector<32x128xf32>
    %6 = tpu.matmul %5, %0, %cst_6 {dimension_numbers = #tpu.dot_dimension_numbers<[1], [0], [0], [1], [0, 0, 1, 1], [], []>} : vector<32x800xbf16>, vector<800x128xbf16>, vector<32x128xf32> -> vector<32x128xf32>
    %7 = arith.maximumf %3, %6 : vector<32x128xf32>
    %c2 = arith.constant 2 : index
    %c0_7 = arith.constant 0 : index
    %c0_8 = arith.constant 0 : index
    %8 = vector.load %arg1[%c2, %c0_7, %c0_8] : memref<4x32x800xbf16, #tpu.memory_space<vmem>>, vector<1x32x800xbf16>
    %9 = vector.shape_cast %8 : vector<1x32x800xbf16> to vector<32x800xbf16>
    %cst_9 = arith.constant dense<0.000000e+00> : vector<32x128xf32>
    %10 = tpu.matmul %9, %0, %cst_9 {dimension_numbers = #tpu.dot_dimension_numbers<[1], [0], [0], [1], [0, 0, 1, 1], [], []>} : vector<32x800xbf16>, vector<800x128xbf16>, vector<32x128xf32> -> vector<32x128xf32>
    %11 = arith.maximumf %7, %10 : vector<32x128xf32>
    %c3 = arith.constant 3 : index
    %c0_10 = arith.constant 0 : index
    %c0_11 = arith.constant 0 : index
    %12 = vector.load %arg1[%c3, %c0_10, %c0_11] : memref<4x32x800xbf16, #tpu.memory_space<vmem>>, vector<1x32x800xbf16>
    %13 = vector.shape_cast %12 : vector<1x32x800xbf16> to vector<32x800xbf16>
    %cst_12 = arith.constant dense<0.000000e+00> : vector<32x128xf32>
    %14 = tpu.matmul %13, %0, %cst_12 {dimension_numbers = #tpu.dot_dimension_numbers<[1], [0], [0], [1], [0, 0, 1, 1], [], []>} : vector<32x800xbf16>, vector<800x128xbf16>, vector<32x128xf32> -> vector<32x128xf32>
    %15 = arith.maximumf %11, %14 : vector<32x128xf32>
    %c0_13 = arith.constant 0 : index
    %c0_14 = arith.constant 0 : index
    %16 = vector.load %arg3[%c0_13, %c0_14] : memref<1x128xf32, #tpu.memory_space<vmem>>, vector<1x128xf32>
    %17 = vector.broadcast %16 : vector<1x128xf32> to vector<32x128xf32>
    %18 = arith.addf %15, %17 : vector<32x128xf32>
    %cst_15 = arith.constant 0.000000e+00 : f32
    %19 = vector.broadcast %cst_15 : f32 to vector<32x128xf32>
    %20 = arith.maximumf %18, %19 : vector<32x128xf32>
    %21 = arith.truncf %20 : vector<32x128xf32> to vector<32x128xbf16>
    %c0_16 = arith.constant 0 : index
    %c0_17 = arith.constant 0 : index
    %22 = vector.load %arg4[%c0_16, %c0_17] : memref<32x128xbf16, #tpu.memory_space<vmem>>, vector<32x128xbf16>
    tpu.vector_store %arg4[%c0_16, %c0_17], %21 {strides = array<i32>} : memref<32x128xbf16, #tpu.memory_space<vmem>>, vector<32x128xbf16>,
    return
  }
  func.func @transform_0(%arg0: i32) -> (i32, i32, i32) {
    %c0_i32 = arith.constant 0 : i32
    %c0_i32_0 = arith.constant 0 : i32
    %c0_i32_1 = arith.constant 0 : i32
    return %c0_i32, %arg0, %c0_i32_0 : i32, i32, i32
  }
  func.func @transform_1(%arg0: i32) -> (i32, i32) {
    %c0_i32 = arith.constant 0 : i32
    %c0_i32_0 = arith.constant 0 : i32
    %c0_i32_1 = arith.constant 0 : i32
    return %c0_i32, %c0_i32_0 : i32, i32
  }
  func.func @transform_2(%arg0: i32) -> (i32, i32) {
    %c0_i32 = arith.constant 0 : i32
    %c0_i32_0 = arith.constant 0 : i32
    %c0_i32_1 = arith.constant 0 : i32
    return %c0_i32, %c0_i32_0 : i32, i32
  }
  func.func @transform_3(%arg0: i32) -> (i32, i32) {
    %c0_i32 = arith.constant 0 : i32
    %c0_i32_0 = arith.constant 0 : i32
    return %arg0, %c0_i32 : i32, i32
  }
}

module attributes {stable_mosaic.version = 11 : i64} {
  func.func @_tail_kernel(%arg0: i32, %arg1: memref<2x256xbf16, #tpu.memory_space<vmem>>, %arg2: memref<256x128xbf16, #tpu.memory_space<vmem>>, %arg3: memref<1x128xf32, #tpu.memory_space<vmem>>, %arg4: memref<128x128xbf16, #tpu.memory_space<vmem>>, %arg5: memref<1x128xf32, #tpu.memory_space<vmem>>, %arg6: memref<128x128xbf16, #tpu.memory_space<vmem>>, %arg7: memref<1x128xf32, #tpu.memory_space<vmem>>, %arg8: memref<128x128xbf16, #tpu.memory_space<vmem>>, %arg9: memref<1x128xf32, #tpu.memory_space<vmem>>, %arg10: memref<2x128xf32, #tpu.memory_space<vmem>>) attributes {dimension_semantics = [#tpu.dimension_semantics<arbitrary>], iteration_bounds = array<i64: 1>, scalar_prefetch = 0 : i64, scratch_operands = 0 : i64, tpu.core_type = #tpu.core_type<tc>, window_params = [{pipeline_mode = #tpu.pipeline_mode<synchronous>, transform_indices = @transform_0, window_bounds = array<i64: 2, 256>}, {pipeline_mode = #tpu.pipeline_mode<synchronous>, transform_indices = @transform_1, window_bounds = array<i64: 256, 128>}, {pipeline_mode = #tpu.pipeline_mode<synchronous>, transform_indices = @transform_2, window_bounds = array<i64: 1, 128>}, {pipeline_mode = #tpu.pipeline_mode<synchronous>, transform_indices = @transform_3, window_bounds = array<i64: 128, 128>}, {pipeline_mode = #tpu.pipeline_mode<synchronous>, transform_indices = @transform_4, window_bounds = array<i64: 1, 128>}, {pipeline_mode = #tpu.pipeline_mode<synchronous>, transform_indices = @transform_5, window_bounds = array<i64: 128, 128>}, {pipeline_mode = #tpu.pipeline_mode<synchronous>, transform_indices = @transform_6, window_bounds = array<i64: 1, 128>}, {pipeline_mode = #tpu.pipeline_mode<synchronous>, transform_indices = @transform_7, window_bounds = array<i64: 128, 128>}, {pipeline_mode = #tpu.pipeline_mode<synchronous>, transform_indices = @transform_8, window_bounds = array<i64: 1, 128>}, {pipeline_mode = #tpu.pipeline_mode<synchronous>, transform_indices = @transform_9, window_bounds = array<i64: 2, 128>}]} {
    %c0 = arith.constant 0 : index
    %c0_0 = arith.constant 0 : index
    %0 = vector.load %arg1[%c0, %c0_0] : memref<2x256xbf16, #tpu.memory_space<vmem>>, vector<2x256xbf16>
    %c0_1 = arith.constant 0 : index
    %c0_2 = arith.constant 0 : index
    %1 = vector.load %arg2[%c0_1, %c0_2] : memref<256x128xbf16, #tpu.memory_space<vmem>>, vector<256x128xbf16>
    %cst = arith.constant dense<0.000000e+00> : vector<2x128xf32>
    %2 = tpu.matmul %0, %1, %cst {dimension_numbers = #tpu.dot_dimension_numbers<[1], [0], [0], [1], [0, 0, 1, 1], [], []>} : vector<2x256xbf16>, vector<256x128xbf16>, vector<2x128xf32> -> vector<2x128xf32>
    %c0_3 = arith.constant 0 : index
    %c0_4 = arith.constant 0 : index
    %3 = vector.load %arg3[%c0_3, %c0_4] : memref<1x128xf32, #tpu.memory_space<vmem>>, vector<1x128xf32>
    %4 = vector.broadcast %3 : vector<1x128xf32> to vector<2x128xf32>
    %5 = arith.addf %2, %4 : vector<2x128xf32>
    %cst_5 = arith.constant 0.000000e+00 : f32
    %6 = vector.broadcast %cst_5 : f32 to vector<2x128xf32>
    %7 = arith.maximumf %5, %6 : vector<2x128xf32>
    %8 = arith.truncf %7 : vector<2x128xf32> to vector<2x128xbf16>
    %c0_6 = arith.constant 0 : index
    %c0_7 = arith.constant 0 : index
    %9 = vector.load %arg4[%c0_6, %c0_7] : memref<128x128xbf16, #tpu.memory_space<vmem>>, vector<128x128xbf16>
    %cst_8 = arith.constant dense<0.000000e+00> : vector<2x128xf32>
    %10 = tpu.matmul %8, %9, %cst_8 {dimension_numbers = #tpu.dot_dimension_numbers<[1], [0], [0], [1], [0, 0, 1, 1], [], []>} : vector<2x128xbf16>, vector<128x128xbf16>, vector<2x128xf32> -> vector<2x128xf32>
    %c0_9 = arith.constant 0 : index
    %c0_10 = arith.constant 0 : index
    %11 = vector.load %arg5[%c0_9, %c0_10] : memref<1x128xf32, #tpu.memory_space<vmem>>, vector<1x128xf32>
    %12 = vector.broadcast %11 : vector<1x128xf32> to vector<2x128xf32>
    %13 = arith.addf %10, %12 : vector<2x128xf32>
    %cst_11 = arith.constant 0.000000e+00 : f32
    %14 = vector.broadcast %cst_11 : f32 to vector<2x128xf32>
    %15 = arith.maximumf %13, %14 : vector<2x128xf32>
    %16 = arith.truncf %15 : vector<2x128xf32> to vector<2x128xbf16>
    %c0_12 = arith.constant 0 : index
    %c0_13 = arith.constant 0 : index
    %17 = vector.load %arg6[%c0_12, %c0_13] : memref<128x128xbf16, #tpu.memory_space<vmem>>, vector<128x128xbf16>
    %cst_14 = arith.constant dense<0.000000e+00> : vector<2x128xf32>
    %18 = tpu.matmul %16, %17, %cst_14 {dimension_numbers = #tpu.dot_dimension_numbers<[1], [0], [0], [1], [0, 0, 1, 1], [], []>} : vector<2x128xbf16>, vector<128x128xbf16>, vector<2x128xf32> -> vector<2x128xf32>
    %c0_15 = arith.constant 0 : index
    %c0_16 = arith.constant 0 : index
    %19 = vector.load %arg7[%c0_15, %c0_16] : memref<1x128xf32, #tpu.memory_space<vmem>>, vector<1x128xf32>
    %20 = vector.broadcast %19 : vector<1x128xf32> to vector<2x128xf32>
    %21 = arith.addf %18, %20 : vector<2x128xf32>
    %cst_17 = arith.constant 0.000000e+00 : f32
    %22 = vector.broadcast %cst_17 : f32 to vector<2x128xf32>
    %23 = arith.maximumf %21, %22 : vector<2x128xf32>
    %24 = arith.truncf %23 : vector<2x128xf32> to vector<2x128xbf16>
    %c0_18 = arith.constant 0 : index
    %c0_19 = arith.constant 0 : index
    %25 = vector.load %arg8[%c0_18, %c0_19] : memref<128x128xbf16, #tpu.memory_space<vmem>>, vector<128x128xbf16>
    %cst_20 = arith.constant dense<0.000000e+00> : vector<2x128xf32>
    %26 = tpu.matmul %24, %25, %cst_20 {dimension_numbers = #tpu.dot_dimension_numbers<[1], [0], [0], [1], [0, 0, 1, 1], [], []>} : vector<2x128xbf16>, vector<128x128xbf16>, vector<2x128xf32> -> vector<2x128xf32>
    %c0_21 = arith.constant 0 : index
    %c0_22 = arith.constant 0 : index
    %27 = vector.load %arg9[%c0_21, %c0_22] : memref<1x128xf32, #tpu.memory_space<vmem>>, vector<1x128xf32>
    %28 = vector.broadcast %27 : vector<1x128xf32> to vector<2x128xf32>
    %29 = arith.addf %26, %28 : vector<2x128xf32>
    %c0_23 = arith.constant 0 : index
    %c0_24 = arith.constant 0 : index
    %30 = vector.load %arg10[%c0_23, %c0_24] : memref<2x128xf32, #tpu.memory_space<vmem>>, vector<2x128xf32>
    tpu.vector_store %arg10[%c0_23, %c0_24], %29 {strides = array<i32>} : memref<2x128xf32, #tpu.memory_space<vmem>>, vector<2x128xf32>,
    return
  }
  func.func @transform_0(%arg0: i32) -> (i32, i32) {
    %c0_i32 = arith.constant 0 : i32
    %c0_i32_0 = arith.constant 0 : i32
    %c0_i32_1 = arith.constant 0 : i32
    return %c0_i32, %c0_i32_0 : i32, i32
  }
  func.func @transform_1(%arg0: i32) -> (i32, i32) {
    %c0_i32 = arith.constant 0 : i32
    %c0_i32_0 = arith.constant 0 : i32
    %c0_i32_1 = arith.constant 0 : i32
    return %c0_i32, %c0_i32_0 : i32, i32
  }
  func.func @transform_2(%arg0: i32) -> (i32, i32) {
    %c0_i32 = arith.constant 0 : i32
    %c0_i32_0 = arith.constant 0 : i32
    %c0_i32_1 = arith.constant 0 : i32
    return %c0_i32, %c0_i32_0 : i32, i32
  }
  func.func @transform_3(%arg0: i32) -> (i32, i32) {
    %c0_i32 = arith.constant 0 : i32
    %c0_i32_0 = arith.constant 0 : i32
    %c0_i32_1 = arith.constant 0 : i32
    return %c0_i32, %c0_i32_0 : i32, i32
  }
  func.func @transform_4(%arg0: i32) -> (i32, i32) {
    %c0_i32 = arith.constant 0 : i32
    %c0_i32_0 = arith.constant 0 : i32
    %c0_i32_1 = arith.constant 0 : i32
    return %c0_i32, %c0_i32_0 : i32, i32
  }
  func.func @transform_5(%arg0: i32) -> (i32, i32) {
    %c0_i32 = arith.constant 0 : i32
    %c0_i32_0 = arith.constant 0 : i32
    %c0_i32_1 = arith.constant 0 : i32
    return %c0_i32, %c0_i32_0 : i32, i32
  }
  func.func @transform_6(%arg0: i32) -> (i32, i32) {
    %c0_i32 = arith.constant 0 : i32
    %c0_i32_0 = arith.constant 0 : i32
    %c0_i32_1 = arith.constant 0 : i32
    return %c0_i32, %c0_i32_0 : i32, i32
  }
  func.func @transform_7(%arg0: i32) -> (i32, i32) {
    %c0_i32 = arith.constant 0 : i32
    %c0_i32_0 = arith.constant 0 : i32
    %c0_i32_1 = arith.constant 0 : i32
    return %c0_i32, %c0_i32_0 : i32, i32
  }
  func.func @transform_8(%arg0: i32) -> (i32, i32) {
    %c0_i32 = arith.constant 0 : i32
    %c0_i32_0 = arith.constant 0 : i32
    %c0_i32_1 = arith.constant 0 : i32
    return %c0_i32, %c0_i32_0 : i32, i32
  }
  func.func @transform_9(%arg0: i32) -> (i32, i32) {
    %c0_i32 = arith.constant 0 : i32
    %c0_i32_0 = arith.constant 0 : i32
    %c0_i32_1 = arith.constant 0 : i32
    return %c0_i32, %c0_i32_0 : i32, i32
  }
}

</mosaic_0001>

<bundles_post_ra>
// kernel: net_forward.3
= control target key start
LH: loop header
LB: loop body
LE: loop exit
PB: predicated region body
PF: predicated region fallthrough
CT: control target
= control target key end

     0   :  { %vm157_vm0 = vcmask 261120   ;;  %s3315_s1 = inlined_call_operand.vmem [shape: bf16[32,128], index: 1, kind: input, shape index: {}]   ;;  %s3316_s0 = inlined_call_operand.vmem [shape: bf16[4,288,32], index: 0, kind: input, shape index: {}]   ;;  %s3317_s2 = inlined_call_operand.vmem [shape: f32[1,128], index: 2, kind: input, shape index: {}]   ;;  %s3318_s3 = inlined_call_operand.vmem [shape: bf16[288,128], index: 3, kind: output, shape index: {}]  }
   0x1   :  { %v2508_v0 = vld [vmem:[%s3315_s1 + $0x8] sm:$0xff]   ;;  %v2509_v1 = vld [vmem:[%s3315_s1] sm:$0xff]   ;;  %v2511_v3 = vld [vmem:[%s3316_s0 + $0x90] sm:$0xff]  }
   0x2   :  { %2348 = vmatprep.subr.bf16.mxu0 %v2508_v0  ;;  %2388 = vmatprep.subr.bf16.mxu1 %v2508_v0  ;;  %v2510_v2 = vld [vmem:[%s3316_s0] sm:$0xff]   ;;  %v2512_v4 = vld [vmem:[%s3316_s0 + $0x8] sm:$0xff]   ;;  %v2513_v5 = vld [vmem:[%s3316_s0 + $0x98] sm:$0xff]  }
   0x3   :  { %2349 = vmatpush3.bf16.msra.mxu0 %v2508_v0  ;;  %2389 = vmatpush3.bf16.msra.mxu1 %v2508_v0  ;;  %v2514_v6 = vld [vmem:[%s3316_s0 + $0x10] sm:$0xff]   ;;  %v2515_v7 = vld [vmem:[%s3316_s0 + $0xa0] sm:$0xff]   ;;  %v2516_v8 = vld [vmem:[%s3316_s0 + $0x18] sm:$0xff]  }
   0x4   :  { %2350 = vmatprep.subr.bf16.mxu0 %v2509_v1  ;;  %2390 = vmatprep.subr.bf16.mxu1 %v2509_v1  ;;  %v2517_v9 = vld [vmem:[%s3316_s0 + $0xa8] sm:$0xff]   ;;  %v2518_v10 = vld [vmem:[%s3316_s0 + $0x20] sm:$0xff]   ;;  %v2519_v11 = vld [vmem:[%s3316_s0 + $0xb0] sm:$0xff]  }
   0x5   :  { %2352 = vmatprep.mubr.msk.bf16.mxu0 %vm157_vm0, %v2510_v2  ;;  %2392 = vmatprep.mubr.msk.bf16.mxu1 %vm157_vm0, %v2511_v3  ;;  %v2520_v12 = vld [vmem:[%s3316_s0 + $0x28] sm:$0xff]   ;;  %v2521_v13 = vld [vmem:[%s3316_s0 + $0xb8] sm:$0xff]   ;;  %v2522_v14 = vld [vmem:[%s3316_s0 + $0x30] sm:$0xff]  }
   0x6   :  { %v2523_v15 = vld [vmem:[%s3316_s0 + $0xc0] sm:$0xff]   ;;  %v2524_v16 = vld [vmem:[%s3316_s0 + $0x38] sm:$0xff]   ;;  %v2525_v17 = vld [vmem:[%s3316_s0 + $0xc8] sm:$0xff]  }
   0x7   :  { %2351 = vmatpush3.bf16.msra.mxu0 %v2509_v1  ;;  %2391 = vmatpush3.bf16.msra.mxu1 %v2509_v1  ;;  %v2526_v18 = vld [vmem:[%s3316_s0 + $0x40] sm:$0xff]   ;;  %v2527_v19 = vld [vmem:[%s3316_s0 + $0xd0] sm:$0xff]   ;;  %v2528_v20 = vld [vmem:[%s3316_s0 + $0x48] sm:$0xff]  }
   0x8   :  { %2428 = vmatprep.subr.bf16.mxu0 %v2508_v0  ;;  %2468 = vmatprep.subr.bf16.mxu1 %v2508_v0  ;;  %v2529_v21 = vld [vmem:[%s3316_s0 + $0xd8] sm:$0xff]   ;;  %v2530_v22 = vld [vmem:[%s3316_s0 + $0x50] sm:$0xff]   ;;  %v2531_v23 = vld [vmem:[%s3316_s0 + $0xe0] sm:$0xff]  }
   0x9   :  { %v2532_v24 = vld [vmem:[%s3316_s0 + $0x58] sm:$0xff]   ;;  %v2533_v25 = vld [vmem:[%s3316_s0 + $0xe8] sm:$0xff]   ;;  %v2534_v26 = vld [vmem:[%s3316_s0 + $0x60] sm:$0xff]  }
   0xa   :  { %2353 = vmatmul.mubr.msk.bf16.vlgmr.msra.gmra.mxu0 %vm157_vm0, %v2512_v4  ;;  %2393 = vmatmul.mubr.msk.bf16.vlgmr.msra.gmra.mxu1 %vm157_vm0, %v2513_v5  ;;  %v2535_v27 = vld [vmem:[%s3316_s0 + $0xf0] sm:$0xff]   ;;  %v2536_v28 = vld [vmem:[%s3316_s0 + $0x68] sm:$0xff]   ;;  %v2537_v29 = vld [vmem:[%s3316_s0 + $0xf8] sm:$0xff]  }
   0xb   :  { %2429 = vmatpush3.bf16.msra.mxu0 %v2508_v0  ;;  %2469 = vmatpush3.bf16.msra.mxu1 %v2508_v0  ;;  %v2538_v30 = vld [vmem:[%s3316_s0 + $0x70] sm:$0xff]   ;;  %v2539_v31 = vld [vmem:[%s3316_s0 + $0x100] sm:$0xff]   ;;  %v2540_v32 = vld [vmem:[%s3316_s0 + $0x78] sm:$0xff]  }
   0xc   :  { %2356 = vmatprep.mubr.msk.bf16.mxu0 %vm157_vm0, %v2514_v6  ;;  %2396 = vmatprep.mubr.msk.bf16.mxu1 %vm157_vm0, %v2515_v7  ;;  %v2541_v33 = vld [vmem:[%s3316_s0 + $0x108] sm:$0xff]   ;;  %v2542_v34 = vld [vmem:[%s3316_s0 + $0x80] sm:$0xff]   ;;  %v2543_v35 = vld [vmem:[%s3316_s0 + $0x110] sm:$0xff]  }
   0xd   :  { %2430 = vmatprep.subr.bf16.mxu0 %v2509_v1  ;;  %2470 = vmatprep.subr.bf16.mxu1 %v2509_v1  ;;  %v2544_v36 = vld [vmem:[%s3316_s0 + $0x88] sm:$0xff]   ;;  %v2545_v37 = vld [vmem:[%s3316_s0 + $0x118] sm:$0xff]   ;;  %v2546_v38 = vld [vmem:[%s3316_s0 + $0x120] sm:$0xff]  }
   0xe   :  { %v2547_v39 = vld [vmem:[%s3316_s0 + $0x1b0] sm:$0xff]   ;;  %v2548_v40 = vld [vmem:[%s3316_s0 + $0x128] sm:$0xff]   ;;  %v2549_v41 = vld [vmem:[%s3316_s0 + $0x1b8] sm:$0xff]  }
   0xf   :  { %2431 = vmatpush3.bf16.msra.mxu0 %v2509_v1  ;;  %2471 = vmatpush3.bf16.msra.mxu1 %v2509_v1  ;;  %v2550_v42 = vld [vmem:[%s3316_s0 + $0x130] sm:$0xff]   ;;  %v2551_v43 = vld [vmem:[%s3316_s0 + $0x1c0] sm:$0xff]   ;;  %v2552_v44 = vld [vmem:[%s3316_s0 + $0x138] sm:$0xff]  }
  0x10   :  { %v2553_v45 = vld [vmem:[%s3316_s0 + $0x1c8] sm:$0xff]   ;;  %v2554_v46 = vld [vmem:[%s3316_s0 + $0x140] sm:$0xff]   ;;  %v2555_v47 = vld [vmem:[%s3316_s0 + $0x1d0] sm:$0xff]  }
  0x11   :  { %v2556_v48 = vld [vmem:[%s3316_s0 + $0x148] sm:$0xff]   ;;  %v2557_v49 = vld [vmem:[%s3316_s0 + $0x1d8] sm:$0xff]   ;;  %v2558_v50 = vld [vmem:[%s3316_s0 + $0x150] sm:$0xff]  }
  0x12   :  { %2357 = vmatmul.mubr.msk.bf16.gmra.mxu0 %vm157_vm0, %v2516_v8  ;;  %2397 = vmatmul.mubr.msk.bf16.gmra.mxu1 %vm157_vm0, %v2517_v9  ;;  %v2559_v51 = vld [vmem:[%s3316_s0 + $0x1e0] sm:$0xff]   ;;  %v2560_v52 = vld [vmem:[%s3316_s0 + $0x158] sm:$0xff]   ;;  %v2561_v53 = vld [vmem:[%s3316_s0 + $0x1e8] sm:$0xff]  }
  0x13   :  { %2360 = vmatprep.mubr.msk.bf16.mxu0 %vm157_vm0, %v2518_v10  ;;  %2400 = vmatprep.mubr.msk.bf16.mxu1 %vm157_vm0, %v2519_v11  ;;  %v2562_v54 = vld [vmem:[%s3316_s0 + $0x160] sm:$0xff]   ;;  %v2563_v55 = vld [vmem:[%s3316_s0 + $0x1f0] sm:$0xff]   ;;  %v2564_v56 = vld [vmem:[%s3316_s0 + $0x168] sm:$0xff]  }
  0x14   :  { %v2565_v57 = vld [vmem:[%s3316_s0 + $0x1f8] sm:$0xff]   ;;  %v2566_v58 = vld [vmem:[%s3316_s0 + $0x170] sm:$0xff]   ;;  %v2567_v59 = vld [vmem:[%s3316_s0 + $0x200] sm:$0xff]  }
  0x15   :  { %v2568_v60 = vld [vmem:[%s3316_s0 + $0x178] sm:$0xff]   ;;  %v2569_v61 = vld [vmem:[%s3316_s0 + $0x208] sm:$0xff]   ;;  %v2570_v62 = vld [vmem:[%s3316_s0 + $0x180] sm:$0xff]  }
  0x16   :  { %v2571_v63 = vld [vmem:[%s3316_s0 + $0x210] sm:$0xff]   ;;  %v2572_v0 = vld [vmem:[%s3316_s0 + $0x188] sm:$0xff]   ;;  %v2573_v1 = vld [vmem:[%s3316_s0 + $0x218] sm:$0xff]  }
  0x17   :  { %v2574_v2 = vld [vmem:[%s3316_s0 + $0x190] sm:$0xff]   ;;  %v2575_v3 = vld [vmem:[%s3316_s0 + $0x220] sm:$0xff]   ;;  %v2576_v4 = vld [vmem:[%s3316_s0 + $0x198] sm:$0xff]  }
  0x18   :  { %v2577_v5 = vld [vmem:[%s3316_s0 + $0x228] sm:$0xff]   ;;  %v2578_v6 = vld [vmem:[%s3316_s0 + $0x1a0] sm:$0xff]   ;;  %v2579_v7 = vld [vmem:[%s3316_s0 + $0x230] sm:$0xff]  }
  0x19   :  { %v2580_v8 = vld [vmem:[%s3316_s0 + $0x1a8] sm:$0xff]   ;;  %v2581_v9 = vld [vmem:[%s3316_s0 + $0x238] sm:$0xff]  }
  0x1a   :  { %2361 = vmatmul.mubr.msk.bf16.gmra.mxu0 %vm157_vm0, %v2520_v12  ;;  %2401 = vmatmul.mubr.msk.bf16.gmra.mxu1 %vm157_vm0, %v2521_v13 }
  0x1b   :  { %2364 = vmatprep.mubr.msk.bf16.mxu0 %vm157_vm0, %v2522_v14  ;;  %2404 = vmatprep.mubr.msk.bf16.mxu1 %vm157_vm0, %v2523_v15 }
  0x22   :  { %2365 = vmatmul.mubr.msk.bf16.gmra.mxu0 %vm157_vm0, %v2524_v16  ;;  %2405 = vmatmul.mubr.msk.bf16.gmra.mxu1 %vm157_vm0, %v2525_v17 }
  0x23   :  { %2368 = vmatprep.mubr.msk.bf16.mxu0 %vm157_vm0, %v2526_v18  ;;  %2408 = vmatprep.mubr.msk.bf16.mxu1 %vm157_vm0, %v2527_v19 }
  0x2a   :  { %2369 = vmatmul.mubr.msk.bf16.gmra.mxu0 %vm157_vm0, %v2528_v20  ;;  %2409 = vmatmul.mubr.msk.bf16.gmra.mxu1 %vm157_vm0, %v2529_v21 }
  0x2b   :  { %2372 = vmatprep.mubr.msk.bf16.mxu0 %vm157_vm0, %v2530_v22  ;;  %2412 = vmatprep.mubr.msk.bf16.mxu1 %vm157_vm0, %v2531_v23 }
  0x32   :  { %2373 = vmatmul.mubr.msk.bf16.gmra.mxu0 %vm157_vm0, %v2532_v24  ;;  %2413 = vmatmul.mubr.msk.bf16.gmra.mxu1 %vm157_vm0, %v2533_v25 }
  0x33   :  { %2376 = vmatprep.mubr.msk.bf16.mxu0 %vm157_vm0, %v2534_v26  ;;  %2416 = vmatprep.mubr.msk.bf16.mxu1 %vm157_vm0, %v2535_v27 }
  0x3a   :  { %2377 = vmatmul.mubr.msk.bf16.gmra.mxu0 %vm157_vm0, %v2536_v28  ;;  %2417 = vmatmul.mubr.msk.bf16.gmra.mxu1 %vm157_vm0, %v2537_v29 }
  0x3b   :  { %2380 = vmatprep.mubr.msk.bf16.mxu0 %vm157_vm0, %v2538_v30  ;;  %2420 = vmatprep.mubr.msk.bf16.mxu1 %vm157_vm0, %v2539_v31 }
  0x42   :  { %2381 = vmatmul.mubr.msk.bf16.gmra.mxu0 %vm157_vm0, %v2540_v32  ;;  %2421 = vmatmul.mubr.msk.bf16.gmra.mxu1 %vm157_vm0, %v2541_v33 }
  0x43   :  { %2384 = vmatprep.mubr.msk.bf16.mxu0 %vm157_vm0, %v2542_v34  ;;  %2424 = vmatprep.mubr.msk.bf16.mxu1 %vm157_vm0, %v2543_v35 }
  0x4a   :  { %2385 = vmatmul.mubr.msk.bf16.gmra.mxu0 %vm157_vm0, %v2544_v36  ;;  %2425 = vmatmul.mubr.msk.bf16.gmra.mxu1 %vm157_vm0, %v2545_v37 }
  0x4b   :  { %2432 = vmatprep.mubr.msk.bf16.mxu0 %vm157_vm0, %v2546_v38  ;;  %2472 = vmatprep.mubr.msk.bf16.mxu1 %vm157_vm0, %v2547_v39 }
  0x52   :  { %2433 = vmatmul.mubr.msk.bf16.vlgmr.msra.gmra.mxu0 %vm157_vm0, %v2548_v40  ;;  %2473 = vmatmul.mubr.msk.bf16.vlgmr.msra.gmra.mxu1 %vm157_vm0, %v2549_v41 }
  0x53   :  { %2436 = vmatprep.mubr.msk.bf16.mxu0 %vm157_vm0, %v2550_v42  ;;  %2476 = vmatprep.mubr.msk.bf16.mxu1 %vm157_vm0, %v2551_v43 }
  0x5a   :  { %2437 = vmatmul.mubr.msk.bf16.gmra.mxu0 %vm157_vm0, %v2552_v44  ;;  %2477 = vmatmul.mubr.msk.bf16.gmra.mxu1 %vm157_vm0, %v2553_v45 }
  0x5b   :  { %2440 = vmatprep.mubr.msk.bf16.mxu0 %vm157_vm0, %v2554_v46  ;;  %2480 = vmatprep.mubr.msk.bf16.mxu1 %vm157_vm0, %v2555_v47 }
  0x62   :  { %2441 = vmatmul.mubr.msk.bf16.gmra.mxu0 %vm157_vm0, %v2556_v48  ;;  %2481 = vmatmul.mubr.msk.bf16.gmra.mxu1 %vm157_vm0, %v2557_v49 }
  0x63   :  { %2444 = vmatprep.mubr.msk.bf16.mxu0 %vm157_vm0, %v2558_v50  ;;  %2484 = vmatprep.mubr.msk.bf16.mxu1 %vm157_vm0, %v2559_v51 }
  0x6a   :  { %2445 = vmatmul.mubr.msk.bf16.gmra.mxu0 %vm157_vm0, %v2560_v52  ;;  %2485 = vmatmul.mubr.msk.bf16.gmra.mxu1 %vm157_vm0, %v2561_v53 }
  0x6b   :  { %2448 = vmatprep.mubr.msk.bf16.mxu0 %vm157_vm0, %v2562_v54  ;;  %2488 = vmatprep.mubr.msk.bf16.mxu1 %vm157_vm0, %v2563_v55 }
  0x72   :  { %2449 = vmatmul.mubr.msk.bf16.gmra.mxu0 %vm157_vm0, %v2564_v56  ;;  %2489 = vmatmul.mubr.msk.bf16.gmra.mxu1 %vm157_vm0, %v2565_v57 }
  0x73   :  { %2452 = vmatprep.mubr.msk.bf16.mxu0 %vm157_vm0, %v2566_v58  ;;  %2492 = vmatprep.mubr.msk.bf16.mxu1 %vm157_vm0, %v2567_v59 }
  0x7a   :  { %2453 = vmatmul.mubr.msk.bf16.gmra.mxu0 %vm157_vm0, %v2568_v60  ;;  %2493 = vmatmul.mubr.msk.bf16.gmra.mxu1 %vm157_vm0, %v2569_v61 }
  0x7b   :  { %2456 = vmatprep.mubr.msk.bf16.mxu0 %vm157_vm0, %v2570_v62  ;;  %2496 = vmatprep.mubr.msk.bf16.mxu1 %vm157_vm0, %v2571_v63 }
  0x82   :  { %2457 = vmatmul.mubr.msk.bf16.gmra.mxu0 %vm157_vm0, %v2572_v0  ;;  %2497 = vmatmul.mubr.msk.bf16.gmra.mxu1 %vm157_vm0, %v2573_v1 }
  0x83   :  { %2460 = vmatprep.mubr.msk.bf16.mxu0 %vm157_vm0, %v2574_v2  ;;  %2500 = vmatprep.mubr.msk.bf16.mxu1 %vm157_vm0, %v2575_v3 }
  0x8a   :  { %2461 = vmatmul.mubr.msk.bf16.gmra.mxu0 %vm157_vm0, %v2576_v4  ;;  %2501 = vmatmul.mubr.msk.bf16.gmra.mxu1 %vm157_vm0, %v2577_v5 }
  0x8b   :  { %2464 = vmatprep.mubr.msk.bf16.mxu0 %vm157_vm0, %v2578_v6  ;;  %2504 = vmatprep.mubr.msk.bf16.mxu1 %vm157_vm0, %v2579_v7 }
  0x92   :  { %2465 = vmatmul.mubr.msk.bf16.gmra.mxu0 %vm157_vm0, %v2580_v8  ;;  %2505 = vmatmul.mubr.msk.bf16.gmra.mxu1 %vm157_vm0, %v2581_v9 }
  0xca   :  { %v2896_v10 = vpop.f32.mrf.mxu0  ;;  %v2898_v11 = vpop.f32.mrf.mxu1 }
  0xcc   :  { %v2902_v13 = vpop.f32.mrf.mxu0  ;;  %v2904_v14 = vpop.f32.mrf.mxu1 }
  0xce   :  { %v2908_v16 = vpop.f32.mrf.mxu0  ;;  %v2910_v17 = vpop.f32.mrf.mxu1 }
  0xd0   :  { %v2914_v19 = vpop.f32.mrf.mxu0  ;;  %v2916_v20 = vpop.f32.mrf.mxu1 }
  0xd2   :  { %v2920_v22 = vpop.f32.mrf.mxu0  ;;  %v2922_v23 = vpop.f32.mrf.mxu1 }
  0xd4   :  { %v2926_v25 = vpop.f32.mrf.mxu0  ;;  %v2928_v26 = vpop.f32.mrf.mxu1 }
  0xd6   :  { %v2932_v28 = vpop.f32.mrf.mxu0  ;;  %v2934_v29 = vpop.f32.mrf.mxu1 }
  0xd8   :  { %v2938_v31 = vpop.f32.mrf.mxu0  ;;  %v2940_v32 = vpop.f32.mrf.mxu1 }
  0xda   :  { %v2944_v34 = vpop.f32.mrf.mxu0  ;;  %v2946_v35 = vpop.f32.mrf.mxu1 }
  0xdc   :  { %v2950_v37 = vpop.f32.mrf.mxu0  ;;  %v2952_v38 = vpop.f32.mrf.mxu1 }
  0xde   :  { %v2956_v40 = vpop.f32.mrf.mxu0  ;;  %v2958_v41 = vpop.f32.mrf.mxu1 }
  0xe0   :  { %v2962_v43 = vpop.f32.mrf.mxu0  ;;  %v2964_v44 = vpop.f32.mrf.mxu1 }
  0xe2   :  { %v2968_v46 = vpop.f32.mrf.mxu0  ;;  %v2970_v47 = vpop.f32.mrf.mxu1 }
  0xe4   :  { %v2974_v49 = vpop.f32.mrf.mxu0  ;;  %v2976_v50 = vpop.f32.mrf.mxu1 }
  0xe6   :  { %v2980_v52 = vpop.f32.mrf.mxu0  ;;  %v2982_v53 = vpop.f32.mrf.mxu1 }
  0xe8   :  { %v2986_v55 = vpop.f32.mrf.mxu0  ;;  %v2988_v56 = vpop.f32.mrf.mxu1 }
  0xea   :  { %v2992_v58 = vpop.f32.mrf.mxu0  ;;  %v2994_v59 = vpop.f32.mrf.mxu1 }
  0xec   :  { %v2998_v61 = vpop.f32.mrf.mxu0  ;;  %v3000_v62 = vpop.f32.mrf.mxu1 }
  0xee   :  { %v3004_v0 = vpop.f32.mrf.mxu0  ;;  %v3006_v1 = vpop.f32.mrf.mxu1 }
  0xf0   :  { %v3010_v3 = vpop.f32.mrf.mxu0  ;;  %v3012_v4 = vpop.f32.mrf.mxu1 }
  0xf2   :  { %v3016_v6 = vpop.f32.mrf.mxu0  ;;  %v3018_v7 = vpop.f32.mrf.mxu1 }
  0xf4   :  { %v3022_v9 = vpop.f32.mrf.mxu0  ;;  %v3024_v63 = vpop.f32.mrf.mxu1 }
  0xf6   :  { %v3028_v60 = vpop.f32.mrf.mxu0  ;;  %v3030_v57 = vpop.f32.mrf.mxu1 }
  0xf8   :  { %v3034_v54 = vpop.f32.mrf.mxu0  ;;  %v3036_v51 = vpop.f32.mrf.mxu1 }
  0xfa   :  { %v3040_v48 = vpop.f32.mrf.mxu0  ;;  %v3042_v45 = vpop.f32.mrf.mxu1 }
  0xfb   :  { %3342 = vst [vmem:[#allocation2_spill] sm:$0xff] %v3042_v45 }
  0xfc   :  { %v3046_v42 = vpop.f32.mrf.mxu0  ;;  %v3048_v39 = vpop.f32.mrf.mxu1 }
  0xfd   :  { %3343 = vst [vmem:[#allocation3_spill] sm:$0xff] %v3046_v42  ;;  %3344 = vst [vmem:[#allocation4_spill] sm:$0xff] %v3048_v39  ;;  %v3366_v42 = vmax.f32 %v2902_v13, %v2904_v14  ;;  %v3368_v13 = vmax.f32 %v2914_v19, %v2916_v20  ;;  %v3370_v19 = vmax.f32 %v2926_v25, %v2928_v26 }
  0xfe   :  { %v3052_v36 = vpop.f32.mrf.mxu0  ;;  %v3054_v33 = vpop.f32.mrf.mxu1  ;;  %v3372_v25 = vmax.f32 %v2938_v31, %v2940_v32 }
  0xff   :  { %3345 = vst [vmem:[#allocation5_spill] sm:$0xff] %v3052_v36  ;;  %3346 = vst [vmem:[#allocation6_spill] sm:$0xff] %v3054_v33  ;;  %v3365_v36 = vmax.f32 %v2896_v10, %v2898_v11 }
 0x100   :  { %v3058_v30 = vpop.f32.mrf.mxu0  ;;  %v3060_v27 = vpop.f32.mrf.mxu1 }
 0x101   :  { %3347 = vst [vmem:[#allocation7_spill] sm:$0xff] %v3058_v30  ;;  %3348 = vst [vmem:[#allocation8_spill] sm:$0xff] %v3060_v27 }
 0x102   :  { %v3064_v24 = vpop.f32.mrf.mxu0  ;;  %v3066_v21 = vpop.f32.mrf.mxu1 }
 0x103   :  { %3349 = vst [vmem:[#allocation9_spill] sm:$0xff] %v3064_v24  ;;  %3350 = vst [vmem:[#allocation10_spill] sm:$0xff] %v3066_v21 }
 0x104   :  { %v3070_v18 = vpop.f32.mrf.mxu0  ;;  %v3072_v15 = vpop.f32.mrf.mxu1 }
 0x105   :  { %3351 = vst [vmem:[#allocation11_spill] sm:$0xff] %v3070_v18  ;;  %3352 = vst [vmem:[#allocation12_spill] sm:$0xff] %v3072_v15 }
 0x106   :  { %v3076_v12 = vpop.f32.mrf.mxu0  ;;  %v3078_v33 = vpop.f32.mrf.mxu1 }
 0x107   :  { %3353 = vst [vmem:[#allocation13_spill] sm:$0xff] %v3076_v12  ;;  %3354 = vst [vmem:[#allocation14_spill] sm:$0xff] %v3078_v33 }
 0x108   :  { %v3082_v27 = vpop.f32.mrf.mxu0  ;;  %v3084_v30 = vpop.f32.mrf.mxu1 }
 0x109   :  { %3355 = vst [vmem:[#allocation15_spill] sm:$0xff] %v3082_v27  ;;  %3356 = vst [vmem:[#allocation16_spill] sm:$0xff] %v3084_v30 }
 0x10a   :  { %v3088_v21 = vpop.f32.mrf.mxu0  ;;  %v3090_v24 = vpop.f32.mrf.mxu1 }
 0x10b   :  { %3357 = vst [vmem:[#allocation17_spill] sm:$0xff] %v3088_v21  ;;  %3358 = vst [vmem:[#allocation18_spill] sm:$0xff] %v3090_v24 }
 0x10c   :  { %v3094_v15 = vpop.f32.mrf.mxu0  ;;  %v3096_v18 = vpop.f32.mrf.mxu1 }
 0x10d   :  { %3359 = vst [vmem:[#allocation19_spill] sm:$0xff] %v3094_v15  ;;  %3360 = vst [vmem:[#allocation20_spill] sm:$0xff] %v3096_v18 }
 0x10e   :  { %v3100_v33 = vpop.f32.mrf.mxu0  ;;  %v3102_v12 = vpop.f32.mrf.mxu1 }
 0x10f   :  { %3361 = vst [vmem:[#allocation21_spill] sm:$0xff] %v3100_v33  ;;  %3362 = vst [vmem:[#allocation22_spill] sm:$0xff] %v3102_v12  ;;  %v3121_v12 = vld [vmem:[%s3317_s2] ss:$0 sm:$0xff] }
 0x110   :  { %v3106_v30 = vpop.f32.mrf.mxu0  ;;  %v3108_v27 = vpop.f32.mrf.mxu1 }
 0x111   :  { %3363 = vst [vmem:[#allocation23_spill] sm:$0xff] %v3106_v30  ;;  %3364 = vst [vmem:[#allocation24_spill] sm:$0xff] %v3108_v27  ;;  %v3367_v30 = vmax.f32 %v2908_v16, %v2910_v17  ;;  %v3369_v16 = vmax.f32 %v2920_v22, %v2922_v23  ;;  %v3371_v22 = vmax.f32 %v2932_v28, %v2934_v29 }
 0x112   :  { %v2434_v24 = vpop.f32.mrf.mxu0  ;;  %v2474_v21 = vpop.f32.mrf.mxu1 }
 0x113   :  { %v1143_v2 = vmax.f32 %v3365_v36, %v2434_v24 }
 0x114   :  { %v998_v18 = vpop.f32.mrf.mxu0  ;;  %v1392_v15 = vpop.f32.mrf.mxu1 }
 0x115   :  { %v1537_v39 = vmax.f32 %v1143_v2, %v2474_v21  ;;  %v1141_v5 = vmax.f32 %v3366_v42, %v998_v18 }
 0x116   :  { %v2435_v33 = vpop.f32.mrf.mxu0  ;;  %v2475_v8 = vpop.f32.mrf.mxu1 }
 0x117   :  { %v1535_v27 = vmax.f32 %v1141_v5, %v1392_v15  ;;  %v1144_v10 = vmax.f32 %v3367_v30, %v2435_v33  ;;  %v1580_v21 = vadd.f32 %v3121_v12, %v1537_v39 }
 0x118   :  { %v1001_v11 = vpop.f32.mrf.mxu0  ;;  %v1395_v24 = vpop.f32.mrf.mxu1 }
 0x119   :  { %v1538_v36 = vmax.f32 %v1144_v10, %v2475_v8  ;;  %v1142_v14 = vmax.f32 %v3368_v13, %v1001_v11  ;;  %v1578_v2 = vadd.f32 %v3121_v12, %v1535_v27  ;;  %v1616_v5 = vmax.f32 %v1580_v21, 0.0 }
 0x11a   :  { %v2438_v18 = vpop.f32.mrf.mxu0  ;;  %v2478_v42 = vpop.f32.mrf.mxu1 }
 0x11b   :  { %v1581_v45 = vadd.f32 %v3121_v12, %v1538_v36  ;;  %v1536_v15 = vmax.f32 %v1142_v14, %v1395_v24  ;;  %v1147_v17 = vmax.f32 %v3369_v16, %v2438_v18  ;;  %v1614_v13 = vmax.f32 %v1578_v2, 0.0 }
 0x11c   :  { %v1014_v30 = vpop.f32.mrf.mxu0  ;;  %v1408_v33 = vpop.f32.mrf.mxu1 }
 0x11d   :  { %v1617_v39 = vmax.f32 %v1581_v45, 0.0  ;;  %v1579_v8 = vadd.f32 %v3121_v12, %v1536_v15  ;;  %v1145_v20 = vmax.f32 %v3370_v19, %v1014_v30  ;;  %v1541_v10 = vmax.f32 %v1147_v17, %v2478_v42 }
 0x11e   :  { %v2439_v11 = vpop.f32.mrf.mxu0  ;;  %v2479_v27 = vpop.f32.mrf.mxu1  ;;  %v3373_v17 = vmax.f32 %v2944_v34, %v2946_v35  ;;  %v3375_v34 = vmax.f32 %v2956_v40, %v2958_v41  ;;  %v3377_v41 = vmax.f32 %v2968_v46, %v2970_v47  ;;  %v3379_v46 = vmax.f32 %v2980_v52, %v2982_v53 }
 0x11f   :  { %v2169_v36 = vpack.c.bf16 %v1617_v39, %v1616_v5  ;;  %v1615_v24 = vmax.f32 %v1579_v8, 0.0  ;;  %v1539_v14 = vmax.f32 %v1145_v20, %v1408_v33  ;;  %v1148_v23 = vmax.f32 %v3371_v22, %v2439_v11 }
 0x120   :  { %v1017_v18 = vpop.f32.mrf.mxu0  ;;  %v1411_v21 = vpop.f32.mrf.mxu1  ;;  %v1584_v42 = vadd.f32 %v3121_v12, %v1541_v10  ;;  %v3374_v8 = vmax.f32 %v2950_v37, %v2952_v38  ;;  %v3376_v37 = vmax.f32 %v2962_v43, %v2964_v44 }
 0x121   :  { %2251 = vst [vmem:[%s3318_s3 + $0x8] sm:$0xff] %v2169_v36   ;;  %v2164_v45 = vpack.c.bf16 %v1615_v24, %v1614_v13  ;;  %v1146_v26 = vmax.f32 %v3372_v25, %v1017_v18  ;;  %v1542_v2 = vmax.f32 %v1148_v23, %v2479_v27  ;;  %v1582_v28 = vadd.f32 %v3121_v12, %v1539_v14 }
 0x122   :  { %v2442_v15 = vpop.f32.mrf.mxu0  ;;  %v2482_v16 = vpop.f32.mrf.mxu1  ;;  %v1620_v20 = vmax.f32 %v1584_v42, 0.0 }
 0x123   :  { %2165 = vst [vmem:[%s3318_s3] sm:$0xff] %v2164_v45   ;;  %v1540_v29 = vmax.f32 %v1146_v26, %v1411_v21  ;;  %v1151_v30 = vmax.f32 %v3373_v17, %v2442_v15  ;;  %v1585_v33 = vadd.f32 %v3121_v12, %v1542_v2  ;;  %v1618_v13 = vmax.f32 %v1582_v28, 0.0 }
 0x124   :  { %v1030_v31 = vpop.f32.mrf.mxu0  ;;  %v1424_v32 = vpop.f32.mrf.mxu1  ;;  %v3378_v17 = vmax.f32 %v2974_v49, %v2976_v50 }
 0x125   :  { %v1583_v5 = vadd.f32 %v3121_v12, %v1540_v29  ;;  %v1545_v39 = vmax.f32 %v1151_v30, %v2482_v16  ;;  %v1149_v19 = vmax.f32 %v3374_v8, %v1030_v31  ;;  %v1621_v10 = vmax.f32 %v1585_v33, 0.0 }
 0x126   :  { %v2443_v11 = vpop.f32.mrf.mxu0  ;;  %v2483_v27 = vpop.f32.mrf.mxu1 }
 0x127   :  { %v1619_v36 = vmax.f32 %v1583_v5, 0.0  ;;  %v1152_v35 = vmax.f32 %v3375_v34, %v2443_v11  ;;  %v2179_v24 = vpack.c.bf16 %v1621_v10, %v1620_v20  ;;  %v1543_v14 = vmax.f32 %v1149_v19, %v1424_v32 }
 0x128   :  { %v1033_v22 = vpop.f32.mrf.mxu0  ;;  %v1427_v23 = vpop.f32.mrf.mxu1  ;;  %v1588_v21 = vadd.f32 %v3121_v12, %v1545_v39  ;;  %v3380_v11 = vmax.f32 %v2986_v55, %v2988_v56 }
 0x129   :  { %v2174_v18 = vpack.c.bf16 %v1619_v36, %v1618_v13  ;;  %v1546_v45 = vmax.f32 %v1152_v35, %v2483_v27  ;;  %2253 = vst [vmem:[%s3318_s3 + $0x18] sm:$0xff] %v2179_v24   ;;  %v1150_v38 = vmax.f32 %v3376_v37, %v1033_v22  ;;  %v1586_v2 = vadd.f32 %v3121_v12, %v1543_v14 }
 0x12a   :  { %v2446_v25 = vpop.f32.mrf.mxu0  ;;  %v2486_v26 = vpop.f32.mrf.mxu1  ;;  %v1624_v29 = vmax.f32 %v1588_v21, 0.0  ;;  %v3381_v24 = vmax.f32 %v2992_v58, %v2994_v59  ;;  %v3382_v21 = vmax.f32 %v2998_v61, %v3000_v62  ;;  %v3384_v61 = vmax.f32 %v3010_v3, %v3012_v4 }
 0x12b   :  { %2252 = vst [vmem:[%s3318_s3 + $0x10] sm:$0xff] %v2174_v18   ;;  %v1589_v40 = vadd.f32 %v3121_v12, %v1546_v45  ;;  %v1155_v42 = vmax.f32 %v3377_v41, %v2446_v25  ;;  %v1544_v15 = vmax.f32 %v1150_v38, %v1427_v23  ;;  %v1622_v8 = vmax.f32 %v1586_v2, 0.0 }
 0x12c   :  { %v1046_v16 = vpop.f32.mrf.mxu0  ;;  %v1440_v28 = vpop.f32.mrf.mxu1  ;;  %v3383_v41 = vmax.f32 %v3004_v0, %v3006_v1 }
 0x12d   :  { %v1625_v43 = vmax.f32 %v1589_v40, 0.0  ;;  %v1549_v44 = vmax.f32 %v1155_v42, %v2486_v26  ;;  %v1153_v30 = vmax.f32 %v3378_v17, %v1046_v16  ;;  %v1587_v33 = vadd.f32 %v3121_v12, %v1544_v15 }
 0x12e   :  { %v2447_v31 = vpop.f32.mrf.mxu0  ;;  %v2487_v32 = vpop.f32.mrf.mxu1  ;;  %v3385_v17 = vmax.f32 %v3016_v6, %v3018_v7  ;;  %v3387_v6 = vmax.f32 %v3028_v60, %v3030_v57  ;;  %v3389_v60 = vld [vmem:[#allocation2_spill] sm:$0xff] }
 0x12f   :  { %v2189_v5 = vpack.c.bf16 %v1625_v43, %v1624_v29  ;;  %v1547_v39 = vmax.f32 %v1153_v30, %v1440_v28  ;;  %v1156_v47 = vmax.f32 %v3379_v46, %v2447_v31  ;;  %v1623_v19 = vmax.f32 %v1587_v33, 0.0 }
 0x130   :  { %v1049_v20 = vpop.f32.mrf.mxu0  ;;  %v1443_v10 = vpop.f32.mrf.mxu1  ;;  %v1592_v49 = vadd.f32 %v3121_v12, %v1549_v44 }
 0x131   :  { %2255 = vst [vmem:[%s3318_s3 + $0x28] sm:$0xff] %v2189_v5   ;;  %v1550_v50 = vmax.f32 %v1156_v47, %v2487_v32  ;;  %v1154_v27 = vmax.f32 %v3380_v11, %v1049_v20  ;;  %v2184_v13 = vpack.c.bf16 %v1623_v19, %v1622_v8  ;;  %v1590_v52 = vadd.f32 %v3121_v12, %v1547_v39 }
 0x132   :  { %v2450_v36 = vpop.f32.mrf.mxu0  ;;  %v2490_v34 = vpop.f32.mrf.mxu1  ;;  %v1628_v55 = vmax.f32 %v1592_v49, 0.0  ;;  %v3386_v5 = vmax.f32 %v3022_v9, %v3024_v63  ;;  %v3388_v63 = vmax.f32 %v3034_v54, %v3036_v51 }
 0x133   :  { %v1593_v53 = vadd.f32 %v3121_v12, %v1550_v50  ;;  %v1548_v35 = vmax.f32 %v1154_v27, %v1443_v10  ;;  %v1159_v14 = vmax.f32 %v3381_v24, %v2450_v36  ;;  %2254 = vst [vmem:[%s3318_s3 + $0x20] sm:$0xff] %v2184_v13   ;;  %v1626_v26 = vmax.f32 %v1590_v52, 0.0 }
 0x134   :  { %v1062_v22 = vpop.f32.mrf.mxu0  ;;  %v1456_v23 = vpop.f32.mrf.mxu1 }
 0x135   :  { %v1629_v56 = vmax.f32 %v1593_v53, 0.0  ;;  %v1591_v18 = vadd.f32 %v3121_v12, %v1548_v35  ;;  %v1157_v45 = vmax.f32 %v3382_v21, %v1062_v22  ;;  %v1553_v37 = vmax.f32 %v1159_v14, %v2490_v34  ;;  %v3392_v21 = vld [vmem:[#allocation4_spill] sm:$0xff] }
 0x136   :  { %v2451_v38 = vpop.f32.mrf.mxu0  ;;  %v2491_v25 = vpop.f32.mrf.mxu1  ;;  %v3390_v35 = vmax.f32 %v3040_v48, %v3389_v60  ;;  %v3394_v48 = vld [vmem:[#allocation5_spill] sm:$0xff] }
 0x137   :  { %v2199_v58 = vpack.c.bf16 %v1629_v56, %v1628_v55  ;;  %v1627_v59 = vmax.f32 %v1591_v18, 0.0  ;;  %v1551_v40 = vmax.f32 %v1157_v45, %v1456_v23  ;;  %v1160_v42 = vmax.f32 %v3383_v41, %v2451_v38  ;;  %v3391_v18 = vld [vmem:[#allocation3_spill] sm:$0xff] }
 0x138   :  { %v1065_v2 = vpop.f32.mrf.mxu0  ;;  %v1459_v15 = vpop.f32.mrf.mxu1  ;;  %v1596_v28 = vadd.f32 %v3121_v12, %v1553_v37  ;;  %v3393_v45 = vmax.f32 %v3391_v18, %v3392_v21 }
 0x139   :  { %2257 = vst [vmem:[%s3318_s3 + $0x38] sm:$0xff] %v2199_v58   ;;  %v2194_v16 = vpack.c.bf16 %v1627_v59, %v1626_v26  ;;  %v1158_v62 = vmax.f32 %v3384_v61, %v1065_v2  ;;  %v1554_v29 = vmax.f32 %v1160_v42, %v2491_v25  ;;  %v1594_v0 = vadd.f32 %v3121_v12, %v1551_v40  ;;  %v3395_v40 = vld [vmem:[#allocation6_spill] sm:$0xff] }
 0x13a   :  { %v2454_v43 = vpop.f32.mrf.mxu0  ;;  %v2494_v44 = vpop.f32.mrf.mxu1  ;;  %v1632_v46 = vmax.f32 %v1596_v28, 0.0  ;;  %v3396_v41 = vmax.f32 %v3394_v48, %v3395_v40 }
 0x13b   :  { %2256 = vst [vmem:[%s3318_s3 + $0x30] sm:$0xff] %v2194_v16   ;;  %v1552_v1 = vmax.f32 %v1158_v62, %v1459_v15  ;;  %v1163_v30 = vmax.f32 %v3385_v17, %v2454_v43  ;;  %v1597_v33 = vadd.f32 %v3121_v12, %v1554_v29  ;;  %v1630_v20 = vmax.f32 %v1594_v0, 0.0  ;;  %v3397_v29 = vld [vmem:[#allocation7_spill] sm:$0xff]  ;;  %v3398_v43 = vld [vmem:[#allocation8_spill] sm:$0xff] }
 0x13c   :  { %v1078_v3 = vpop.f32.mrf.mxu0  ;;  %v1472_v4 = vpop.f32.mrf.mxu1 }
 0x13d   :  { %v1595_v31 = vadd.f32 %v3121_v12, %v1552_v1  ;;  %v1557_v32 = vmax.f32 %v1163_v30, %v2494_v44  ;;  %v1161_v39 = vmax.f32 %v3386_v5, %v1078_v3  ;;  %v1633_v47 = vmax.f32 %v1597_v33, 0.0 }
 0x13e   :  { %v2455_v8 = vpop.f32.mrf.mxu0  ;;  %v2495_v19 = vpop.f32.mrf.mxu1  ;;  %v3399_v44 = vmax.f32 %v3397_v29, %v3398_v43 }
 0x13f   :  { %v1631_v10 = vmax.f32 %v1595_v31, 0.0  ;;  %v1164_v7 = vmax.f32 %v3387_v6, %v2455_v8  ;;  %v2209_v49 = vpack.c.bf16 %v1633_v47, %v1632_v46  ;;  %v1555_v50 = vmax.f32 %v1161_v39, %v1472_v4  ;;  %v3400_v31 = vld [vmem:[#allocation9_spill] sm:$0xff]  ;;  %v3404_v6 = vld [vmem:[#allocation12_spill] sm:$0xff] }
 0x140   :  { %v1081_v11 = vpop.f32.mrf.mxu0  ;;  %v1475_v27 = vpop.f32.mrf.mxu1  ;;  %v1600_v36 = vadd.f32 %v3121_v12, %v1557_v32  ;;  %v3401_v32 = vld [vmem:[#allocation10_spill] sm:$0xff] }
 0x141   :  { %v2204_v13 = vpack.c.bf16 %v1631_v10, %v1630_v20  ;;  %v1558_v34 = vmax.f32 %v1164_v7, %v2495_v19  ;;  %2259 = vst [vmem:[%s3318_s3 + $0x48] sm:$0xff] %v2209_v49   ;;  %v1162_v9 = vmax.f32 %v3388_v63, %v1081_v11  ;;  %v1598_v14 = vadd.f32 %v3121_v12, %v1555_v50  ;;  %v3403_v10 = vld [vmem:[#allocation11_spill] sm:$0xff] }
 0x142   :  { %v2458_v52 = vpop.f32.mrf.mxu0  ;;  %v2498_v53 = vpop.f32.mrf.mxu1  ;;  %v1636_v56 = vmax.f32 %v1600_v36, 0.0  ;;  %v3402_v5 = vmax.f32 %v3400_v31, %v3401_v32  ;;  %v3405_v7 = vmax.f32 %v3403_v10, %v3404_v6 }
 0x143   :  { %2258 = vst [vmem:[%s3318_s3 + $0x40] sm:$0xff] %v2204_v13   ;;  %v1601_v57 = vadd.f32 %v3121_v12, %v1558_v34  ;;  %v1167_v24 = vmax.f32 %v3390_v35, %v2458_v52  ;;  %v1556_v22 = vmax.f32 %v1162_v9, %v1475_v27  ;;  %v1634_v2 = vmax.f32 %v1598_v14, 0.0  ;;  %v3406_v9 = vld [vmem:[#allocation13_spill] sm:$0xff]  ;;  %v3407_v52 = vld [vmem:[#allocation14_spill] sm:$0xff]  ;;  %v3409_v14 = vld [vmem:[#allocation15_spill] sm:$0xff] }
 0x144   :  { %v1094_v23 = vpop.f32.mrf.mxu0  ;;  %v1488_v55 = vpop.f32.mrf.mxu1 }
 0x145   :  { %v1637_v51 = vmax.f32 %v1601_v57, 0.0  ;;  %v1561_v54 = vmax.f32 %v1167_v24, %v2498_v53  ;;  %v1165_v37 = vmax.f32 %v3393_v45, %v1094_v23  ;;  %v1599_v38 = vadd.f32 %v3121_v12, %v1556_v22  ;;  %v3410_v22 = vld [vmem:[#allocation16_spill] sm:$0xff] }
 0x146   :  { %v2459_v25 = vpop.f32.mrf.mxu0  ;;  %v2499_v26 = vpop.f32.mrf.mxu1  ;;  %v3408_v53 = vmax.f32 %v3406_v9, %v3407_v52  ;;  %v3411_v23 = vmax.f32 %v3409_v14, %v3410_v22 }
 0x147   :  { %v2219_v58 = vpack.c.bf16 %v1637_v51, %v1636_v56  ;;  %v1559_v59 = vmax.f32 %v1165_v37, %v1488_v55  ;;  %v1168_v42 = vmax.f32 %v3396_v41, %v2459_v25  ;;  %v1635_v15 = vmax.f32 %v1599_v38, 0.0  ;;  %v3412_v37 = vld [vmem:[#allocation17_spill] sm:$0xff]  ;;  %v3413_v38 = vld [vmem:[#allocation18_spill] sm:$0xff] }
 0x148   :  { %v1097_v16 = vpop.f32.mrf.mxu0  ;;  %v1491_v61 = vpop.f32.mrf.mxu1  ;;  %v1604_v62 = vadd.f32 %v3121_v12, %v1561_v54  ;;  %v3414_v25 = vmax.f32 %v3412_v37, %v3413_v38 }
 0x149   :  { %2261 = vst [vmem:[%s3318_s3 + $0x58] sm:$0xff] %v2219_v58   ;;  %v1562_v28 = vmax.f32 %v1168_v42, %v2499_v26  ;;  %v1166_v0 = vmax.f32 %v3399_v44, %v1097_v16  ;;  %v2214_v1 = vpack.c.bf16 %v1635_v15, %v1634_v2  ;;  %v1602_v33 = vadd.f32 %v3121_v12, %v1559_v59  ;;  %v3415_v42 = vld [vmem:[#allocation19_spill] sm:$0xff]  ;;  %v3416_v2 = vld [vmem:[#allocation20_spill] sm:$0xff]  ;;  %v3418_v44 = vld [vmem:[#allocation21_spill] sm:$0xff] }
 0x14a   :  { %v2462_v17 = vpop.f32.mrf.mxu0  ;;  %v2502_v30 = vpop.f32.mrf.mxu1  ;;  %v1640_v8 = vmax.f32 %v1604_v62, 0.0  ;;  %v3417_v15 = vmax.f32 %v3415_v42, %v3416_v2 }
 0x14b   :  { %v1605_v3 = vadd.f32 %v3121_v12, %v1562_v28  ;;  %v1560_v4 = vmax.f32 %v1166_v0, %v1491_v61  ;;  %v1171_v39 = vmax.f32 %v3402_v5, %v2462_v17  ;;  %2260 = vst [vmem:[%s3318_s3 + $0x50] sm:$0xff] %v2214_v1   ;;  %v1638_v13 = vmax.f32 %v1602_v33, 0.0  ;;  %v3419_v0 = vld [vmem:[#allocation22_spill] sm:$0xff] }
 0x14c   :  { %v1110_v46 = vpop.f32.mrf.mxu0  ;;  %v1504_v47 = vpop.f32.mrf.mxu1  ;;  %v3420_v1 = vmax.f32 %v3418_v44, %v3419_v0 }
 0x14d   :  { %v1641_v19 = vmax.f32 %v1605_v3, 0.0  ;;  %v1603_v20 = vadd.f32 %v3121_v12, %v1560_v4  ;;  %v1169_v49 = vmax.f32 %v3405_v7, %v1110_v46  ;;  %v1565_v50 = vmax.f32 %v1171_v39, %v2502_v30  ;;  %v3421_v39 = vld [vmem:[#allocation23_spill] sm:$0xff]  ;;  %v3422_v46 = vld [vmem:[#allocation24_spill] sm:$0xff] }
 0x14e   :  { %v2463_v11 = vpop.f32.mrf.mxu0  ;;  %v2503_v27 = vpop.f32.mrf.mxu1 }
 0x14f   :  { %v2229_v36 = vpack.c.bf16 %v1641_v19, %v1640_v8  ;;  %v1639_v34 = vmax.f32 %v1603_v20, 0.0  ;;  %v1563_v63 = vmax.f32 %v1169_v49, %v1504_v47  ;;  %v1172_v57 = vmax.f32 %v3408_v53, %v2463_v11 }
 0x150   :  { %v1113_v60 = vpop.f32.mrf.mxu0  ;;  %v1507_v35 = vpop.f32.mrf.mxu1  ;;  %v1608_v56 = vadd.f32 %v3121_v12, %v1565_v50  ;;  %v3423_v47 = vmax.f32 %v3421_v39, %v3422_v46 }
 0x151   :  { %2263 = vst [vmem:[%s3318_s3 + $0x68] sm:$0xff] %v2229_v36   ;;  %v2224_v24 = vpack.c.bf16 %v1639_v34, %v1638_v13  ;;  %v1170_v55 = vmax.f32 %v3411_v23, %v1113_v60  ;;  %v1566_v51 = vmax.f32 %v1172_v57, %v2503_v27  ;;  %v1606_v21 = vadd.f32 %v3121_v12, %v1563_v63 }
 0x152   :  { %v2466_v54 = vpop.f32.mrf.mxu0  ;;  %v2506_v18 = vpop.f32.mrf.mxu1  ;;  %v1644_v61 = vmax.f32 %v1608_v56, 0.0 }
 0x153   :  { %2262 = vst [vmem:[%s3318_s3 + $0x60] sm:$0xff] %v2224_v24   ;;  %v1564_v45 = vmax.f32 %v1170_v55, %v1507_v35  ;;  %v1175_v26 = vmax.f32 %v3414_v25, %v2466_v54  ;;  %v1609_v58 = vadd.f32 %v3121_v12, %v1566_v51  ;;  %v1642_v29 = vmax.f32 %v1606_v21, 0.0 }
 0x154   :  { %v1126_v59 = vpop.f32.mrf.mxu0  ;;  %v1520_v48 = vpop.f32.mrf.mxu1 }
 0x155   :  { %v1607_v40 = vadd.f32 %v3121_v12, %v1564_v45  ;;  %v1569_v41 = vmax.f32 %v1175_v26, %v2506_v18  ;;  %v1173_v16 = vmax.f32 %v3417_v15, %v1126_v59  ;;  %v1645_v62 = vmax.f32 %v1609_v58, 0.0 }
 0x156   :  { %v2467_v28 = vpop.f32.mrf.mxu0  ;;  %v2507_v30 = vpop.f32.mrf.mxu1 }
 0x157   :  { %v1643_v43 = vmax.f32 %v1607_v40, 0.0  ;;  %v1176_v17 = vmax.f32 %v3420_v1, %v2467_v28  ;;  %v2239_v33 = vpack.c.bf16 %v1645_v62, %v1644_v61  ;;  %v1567_v3 = vmax.f32 %v1173_v16, %v1520_v48 }
 0x158   :  { %v1129_v4 = vpop.f32.mrf.mxu0  ;;  %v1612_v32 = vadd.f32 %v3121_v12, %v1569_v41  ;;  %v1523_v20 = vpop.f32.mrf.mxu1 }
 0x159   :  { %v2234_v31 = vpack.c.bf16 %v1643_v43, %v1642_v29  ;;  %v1570_v5 = vmax.f32 %v1176_v17, %v2507_v30  ;;  %2265 = vst [vmem:[%s3318_s3 + $0x78] sm:$0xff] %v2239_v33   ;;  %v1174_v8 = vmax.f32 %v3423_v47, %v1129_v4  ;;  %v1610_v10 = vadd.f32 %v3121_v12, %v1567_v3 }
 0x15a   :  { %v1648_v7 = vmax.f32 %v1612_v32, 0.0 }
 0x15b   :  { %2264 = vst [vmem:[%s3318_s3 + $0x70] sm:$0xff] %v2234_v31   ;;  %v1613_v19 = vadd.f32 %v3121_v12, %v1570_v5  ;;  %v1568_v6 = vmax.f32 %v1174_v8, %v1523_v20  ;;  %v1646_v27 = vmax.f32 %v1610_v10, 0.0 }
 0x15d   :  { %v1649_v49 = vmax.f32 %v1613_v19, 0.0  ;;  %v1611_v50 = vadd.f32 %v3121_v12, %v1568_v6 }
 0x15f   :  { %v2249_v11 = vpack.c.bf16 %v1649_v49, %v1648_v7  ;;  %v1647_v13 = vmax.f32 %v1611_v50, 0.0 }
 0x161   :  { %2267 = vst [vmem:[%s3318_s3 + $0x88] sm:$0xff] %v2249_v11   ;;  %v2244_v36 = vpack.c.bf16 %v1647_v13, %v1646_v27 }
 0x163   :  { %2266 = vst [vmem:[%s3318_s3 + $0x80] sm:$0xff] %v2244_v36  }

// kernel: net_forward.4
= control target key start
LH: loop header
LB: loop body
LE: loop exit
PB: predicated region body
PF: predicated region fallthrough
CT: control target
= control target key end

     0   :  { %vm501_vm0 = vcmask 261120   ;;  %s3023_s1 = inlined_call_operand.vmem [shape: bf16[800,128], index: 1, kind: input, shape index: {}]   ;;  %s3024_s0 = inlined_call_operand.vmem [shape: bf16[4,32,800], index: 0, kind: input, shape index: {}]   ;;  %s3025_s2 = inlined_call_operand.vmem [shape: f32[1,128], index: 2, kind: input, shape index: {}]   ;;  %s3026_s3 = inlined_call_operand.vmem [shape: bf16[32,128], index: 3, kind: output, shape index: {}]  }
   0x1   :  { %v2341_v0 = vld [vmem:[%s3023_s1 + $0x78] sm:$0xff]   ;;  %v2364_v4 = vld [vmem:[%s3023_s1 + $0x70] sm:$0xff]   ;;  %v2388_v8 = vld [vmem:[%s3023_s1 + $0x68] sm:$0xff]  }
   0x2   :  { %v2346_v1 = vld [vmem:[%s3023_s1 + $0xf8] sm:$0xff]   ;;  %1804 = vmatprep.subr.bf16.mxu0 %v2341_v0  ;;  %v2370_v5 = vld [vmem:[%s3023_s1 + $0xf0] sm:$0xff]   ;;  %v2394_v9 = vld [vmem:[%s3023_s1 + $0xe8] sm:$0xff]  }
   0x3   :  { %v2352_v2 = vld [vmem:[%s3023_s1 + $0x38] sm:$0xff]   ;;  %1832 = vmatprep.subr.bf16.mxu1 %v2346_v1  ;;  %v2376_v6 = vld [vmem:[%s3023_s1 + $0x30] sm:$0xff]   ;;  %v2400_v10 = vld [vmem:[%s3023_s1 + $0x28] sm:$0xff]  }
   0x4   :  { %v2358_v3 = vld [vmem:[%s3023_s1 + $0xb8] sm:$0xff]   ;;  %1805 = vmatpush3.bf16.msra.mxu0 %v2352_v2  ;;  %v2382_v7 = vld [vmem:[%s3023_s1 + $0xb0] sm:$0xff]   ;;  %v2406_v11 = vld [vmem:[%s3023_s1 + $0xa8] sm:$0xff]  }
   0x5   :  { %1833 = vmatpush3.bf16.msra.mxu1 %v2358_v3  ;;  %1806 = vmatprep.subr.bf16.mxu0 %v2364_v4  ;;  %v2412_v12 = vld [vmem:[%s3023_s1 + $0x60] sm:$0xff]   ;;  %v2436_v16 = vld [vmem:[%s3023_s1 + $0x58] sm:$0xff]   ;;  %v2460_v20 = vld [vmem:[%s3023_s1 + $0x50] sm:$0xff]  }
   0x6   :  { %1834 = vmatprep.subr.bf16.mxu1 %v2370_v5  ;;  %v2418_v13 = vld [vmem:[%s3023_s1 + $0xe0] sm:$0xff]   ;;  %v2442_v17 = vld [vmem:[%s3023_s1 + $0xd8] sm:$0xff]   ;;  %v2466_v21 = vld [vmem:[%s3023_s1 + $0xd0] sm:$0xff]  }
   0x7   :  { %v2424_v14 = vld [vmem:[%s3023_s1 + $0x20] sm:$0xff]   ;;  %v2448_v18 = vld [vmem:[%s3023_s1 + $0x18] sm:$0xff]   ;;  %v2472_v22 = vld [vmem:[%s3023_s1 + $0x10] sm:$0xff]  }
   0x8   :  { %1807 = vmatpush3.bf16.msra.mxu0 %v2376_v6  ;;  %v2430_v15 = vld [vmem:[%s3023_s1 + $0xa0] sm:$0xff]   ;;  %v2454_v19 = vld [vmem:[%s3023_s1 + $0x98] sm:$0xff]   ;;  %v2478_v23 = vld [vmem:[%s3023_s1 + $0x90] sm:$0xff]  }
   0x9   :  { %1835 = vmatpush3.bf16.msra.mxu1 %v2382_v7  ;;  %1808 = vmatprep.subr.bf16.mxu0 %v2388_v8  ;;  %v2484_v24 = vld [vmem:[%s3023_s1 + $0x48] sm:$0xff]   ;;  %v2508_v28 = vld [vmem:[%s3023_s1 + $0x40] sm:$0xff]   ;;  %v2545_v36 = vld [vmem:[%s3023_s1 + $0x178] sm:$0xff]  }
   0xa   :  { %1836 = vmatprep.subr.bf16.mxu1 %v2394_v9  ;;  %v2490_v25 = vld [vmem:[%s3023_s1 + $0xc8] sm:$0xff]   ;;  %v2514_v29 = vld [vmem:[%s3023_s1 + $0xc0] sm:$0xff]   ;;  %v2556_v38 = vld [vmem:[%s3023_s1 + $0x138] sm:$0xff]  }
   0xb   :  { %v2496_v26 = vld [vmem:[%s3023_s1 + $0x8] sm:$0xff]   ;;  %v2520_v30 = vld [vmem:[%s3023_s1] sm:$0xff]   ;;  %v2562_v39 = vld [vmem:[%s3023_s1 + $0x170] sm:$0xff]  }
   0xc   :  { %1809 = vmatpush3.bf16.msra.mxu0 %v2400_v10  ;;  %v2502_v27 = vld [vmem:[%s3023_s1 + $0x88] sm:$0xff]   ;;  %v2526_v31 = vld [vmem:[%s3023_s1 + $0x80] sm:$0xff]   ;;  %v2569_v40 = vld [vmem:[%s3023_s1 + $0x130] sm:$0xff]  }
   0xd   :  { %1837 = vmatpush3.bf16.msra.mxu1 %v2406_v11  ;;  %1810 = vmatprep.subr.bf16.mxu0 %v2412_v12  ;;  %v2220_v32 = vld [vmem:[%s3024_s0] ss:$28 sps:$4 sm:$0xff]   ;;  %v2223_v34 = vld [vmem:[%s3024_s0 + $0x8] ss:$28 sps:$4 sm:$0xff]   ;;  %v2235_v43 = vld [vmem:[%s3024_s0 + $0x38] ss:$28 sps:$4 sm:$0xff]  }
   0xe   :  { %1838 = vmatprep.subr.bf16.mxu1 %v2418_v13  ;;  %v2222_v33 = vld [vmem:[%s3024_s0 + $0x4] ss:$28 sps:$4 sm:$0xff]   ;;  %v2225_v35 = vld [vmem:[%s3024_s0 + $0xc] ss:$28 sps:$4 sm:$0xff]   ;;  %v2231_v41 = vld [vmem:[%s3024_s0 + $0x3c] ss:$28 sps:$4 sm:$0xff]  }
   0xf   :  { %540 = vmatprep.mubr.bf16.mxu0 %v2222_v33  ;;  %589 = vmatprep.mubr.bf16.mxu1 %v2225_v35  ;;  %v2550_v37 = vld [vmem:[%s3023_s1 + $0x188] sm:$0xff]   ;;  %v2233_v42 = vld [vmem:[%s3024_s0 + $0x44] ss:$28 sps:$4 sm:$0xff]   ;;  %v2242_v50 = vld [vmem:[%s3024_s0 + $0x18] ss:$28 sps:$4 sm:$0xff]  }
  0x10   :  { %1811 = vmatpush3.bf16.msra.mxu0 %v2424_v14  ;;  %v2236_v44 = vld [vmem:[%s3024_s0 + $0x40] ss:$28 sps:$4 sm:$0xff]   ;;  %v2588_v45 = vld [vmem:[%s3023_s1 + $0x168] sm:$0xff]   ;;  %v2638_v54 = vld [vmem:[%s3023_s1 + $0x150] sm:$0xff]  }
  0x11   :  { %1839 = vmatpush3.bf16.msra.mxu1 %v2430_v15  ;;  %1812 = vmatprep.subr.bf16.mxu0 %v2436_v16  ;;  %v2593_v46 = vld [vmem:[%s3023_s1 + $0x180] sm:$0xff]   ;;  %v2599_v47 = vld [vmem:[%s3023_s1 + $0x128] sm:$0xff]   ;;  %v2622_v51 = vld [vmem:[%s3023_s1 + $0x158] sm:$0xff]  }
  0x12   :  { %1840 = vmatprep.subr.bf16.mxu1 %v2442_v17  ;;  %v2605_v48 = vld [vmem:[%s3023_s1 + $0x160] sm:$0xff]   ;;  %v2244_v52 = vld [vmem:[%s3024_s0 + $0x50] ss:$28 sps:$4 sm:$0xff]   ;;  %v2632_v53 = vld [vmem:[%s3023_s1 + $0x118] sm:$0xff]  }
  0x13   :  { %v2612_v49 = vld [vmem:[%s3023_s1 + $0x120] sm:$0xff]   ;;  %v2647_v55 = vld [vmem:[%s3023_s1 + $0x110] sm:$0xff]   ;;  %v2653_v56 = vld [vmem:[%s3023_s1 + $0x148] sm:$0xff]  }
  0x14   :  { %1813 = vmatpush3.bf16.msra.mxu0 %v2448_v18  ;;  %v2254_v57 = vld [vmem:[%s3024_s0 + $0x14] ss:$28 sps:$4 sm:$0xff]   ;;  %v2664_v58 = vld [vmem:[%s3023_s1 + $0x108] sm:$0xff]   ;;  %v2670_v59 = vld [vmem:[%s3023_s1 + $0x140] sm:$0xff]  }
  0x15   :  { %1841 = vmatpush3.bf16.msra.mxu1 %v2454_v19  ;;  %1814 = vmatprep.subr.bf16.mxu0 %v2460_v20  ;;  %v2260_v60 = vld [vmem:[%s3024_s0 + $0x74] ss:$28 sps:$4 sm:$0xff]   ;;  %v2681_v61 = vld [vmem:[%s3023_s1 + $0x100] sm:$0xff]   ;;  %v2255_v63 = vld [vmem:[%s3024_s0 + $0x4c] ss:$28 sps:$4 sm:$0xff]  }
  0x16   :  { %1842 = vmatprep.subr.bf16.mxu1 %v2466_v21  ;;  %v2252_v62 = vld [vmem:[%s3024_s0 + $0x10] ss:$28 sps:$4 sm:$0xff]   ;;  %v2263_v33 = vld [vmem:[%s3024_s0 + $0x7c] ss:$28 sps:$4 sm:$0xff]  }
  0x17   :  { %v2264_v35 = vld [vmem:[%s3024_s0 + $0xac] ss:$28 sps:$4 sm:$0xff]  }
  0x18   :  { %1815 = vmatpush3.bf16.msra.mxu0 %v2472_v22 }
  0x19   :  { %1843 = vmatpush3.bf16.msra.mxu1 %v2478_v23  ;;  %1816 = vmatprep.subr.bf16.mxu0 %v2484_v24 }
  0x1a   :  { %1844 = vmatprep.subr.bf16.mxu1 %v2490_v25 }
  0x1c   :  { %1817 = vmatpush3.bf16.msra.mxu0 %v2496_v26 }
  0x1d   :  { %1845 = vmatpush3.bf16.msra.mxu1 %v2502_v27  ;;  %1818 = vmatprep.subr.bf16.mxu0 %v2508_v28 }
  0x1e   :  { %1846 = vmatprep.subr.bf16.mxu1 %v2514_v29 }
  0x20   :  { %1819 = vmatpush3.bf16.msra.mxu0 %v2520_v30 }
  0x21   :  { %1847 = vmatpush3.bf16.msra.mxu1 %v2526_v31  ;;  %1860 = vmatprep.subr.bf16.mxu0 %v2545_v36 }
  0x22   :  { %2156 = vmatprep.subr.bf16.mxu1 %v2550_v37 }
  0x23   :  { %541 = vmatmul.mubr.bf16.vlgmr.msra.gmra.mxu0 %v2220_v32  ;;  %v2257_v32 = vld [vmem:[%s3024_s0 + $0x48] ss:$28 sps:$4 sm:$0xff]  }
  0x24   :  { %590 = vmatmul.mubr.bf16.vlgmr.msra.gmra.mxu1 %v2223_v34  ;;  %1861 = vmatpush3.bf16.msra.mxu0 %v2556_v38  ;;  %v2258_v34 = vld [vmem:[%s3024_s0 + $0x70] ss:$28 sps:$4 sm:$0xff]  }
  0x25   :  { %2157 = vmatpush3.bf16.msra.mxu1 %v2550_v37  ;;  %1862 = vmatprep.subr.bf16.mxu0 %v2562_v39 }
  0x26   :  { %548 = vmatprep.mubr.bf16.mxu0 %v2231_v41  ;;  %597 = vmatprep.mubr.bf16.mxu1 %v2233_v42  ;;  %v2266_v41 = vld [vmem:[%s3024_s0 + $0xa8] ss:$28 sps:$4 sm:$0xff]  }
  0x27   :  { %2158 = vmatprep.subr.bf16.mxu1 %v2593_v46  ;;  %v2272_v42 = vld [vmem:[%s3024_s0 + $0x84] ss:$28 sps:$4 sm:$0xff]  }
  0x28   :  { %1863 = vmatpush3.bf16.msra.mxu0 %v2569_v40 }
  0x29   :  { %1864 = vmatprep.subr.bf16.mxu0 %v2588_v45  ;;  %2159 = vmatpush3.bf16.msra.mxu1 %v2593_v46 }
  0x2a   :  { %1892 = vmatprep.subr.bf16.mxu1 %v2341_v0 }
  0x2b   :  { %549 = vmatmul.mubr.bf16.gmra.mxu0 %v2235_v43  ;;  %v2261_v43 = vld [vmem:[%s3024_s0 + $0x78] ss:$28 sps:$4 sm:$0xff]  }
  0x2c   :  { %598 = vmatmul.mubr.bf16.gmra.mxu1 %v2236_v44  ;;  %1865 = vmatpush3.bf16.msra.mxu0 %v2599_v47  ;;  %v2267_v44 = vld [vmem:[%s3024_s0 + $0xb4] ss:$28 sps:$4 sm:$0xff]  }
  0x2d   :  { %1866 = vmatprep.subr.bf16.mxu0 %v2605_v48  ;;  %2160 = vmatprep.mubr.msk.bf16.mxu1 %vm501_vm0, %v2242_v50  ;;  %v2269_v50 = vld [vmem:[%s3024_s0 + $0xb0] ss:$28 sps:$4 sm:$0xff]  }
  0x2e   :  { %638 = vmatprep.mubr.bf16.mxu0 %v2254_v57  ;;  %v2270_v57 = vld [vmem:[%s3024_s0 + $0x80] ss:$28 sps:$4 sm:$0xff]  }
  0x30   :  { %1867 = vmatpush3.bf16.msra.mxu0 %v2612_v49 }
  0x31   :  { %1868 = vmatprep.subr.bf16.mxu0 %v2622_v51 }
  0x34   :  { %2161 = vmatmul.mubr.msk.bf16.vlgmr.msra.gmra.mxu1 %vm501_vm0, %v2244_v52  ;;  %1869 = vmatpush3.bf16.msra.mxu0 %v2632_v53  ;;  %v2273_v52 = vld [vmem:[%s3024_s0 + $0x88] ss:$28 sps:$4 sm:$0xff]  }
  0x35   :  { %1893 = vmatpush3.bf16.msra.mxu1 %v2352_v2  ;;  %1870 = vmatprep.subr.bf16.mxu0 %v2638_v54 }
  0x36   :  { %1894 = vmatprep.subr.bf16.mxu1 %v2364_v4  ;;  %829 = vmatprep.mubr.bf16.mxu1 %v2260_v60  ;;  %v2274_v60 = vld [vmem:[%s3024_s0 + $0xc0] ss:$28 sps:$4 sm:$0xff]  }
  0x38   :  { %1871 = vmatpush3.bf16.msra.mxu0 %v2647_v55 }
  0x39   :  { %1895 = vmatpush3.bf16.msra.mxu1 %v2376_v6  ;;  %1872 = vmatprep.subr.bf16.mxu0 %v2653_v56 }
  0x3a   :  { %1896 = vmatprep.subr.bf16.mxu1 %v2388_v8 }
  0x3c   :  { %1873 = vmatpush3.bf16.msra.mxu0 %v2664_v58 }
  0x3d   :  { %1897 = vmatpush3.bf16.msra.mxu1 %v2400_v10  ;;  %1874 = vmatprep.subr.bf16.mxu0 %v2670_v59 }
  0x3e   :  { %1898 = vmatprep.subr.bf16.mxu1 %v2412_v12 }
  0x40   :  { %1875 = vmatpush3.bf16.msra.mxu0 %v2681_v61 }
  0x41   :  { %1899 = vmatpush3.bf16.msra.mxu1 %v2424_v14  ;;  %1920 = vmatprep.subr.bf16.mxu0 %v2346_v1 }
  0x42   :  { %1900 = vmatprep.subr.bf16.mxu1 %v2436_v16 }
  0x43   :  { %639 = vmatmul.mubr.bf16.vlgmr.msra.gmra.mxu0 %v2252_v62  ;;  %v2275_v62 = vld [vmem:[%s3024_s0 + $0xbc] ss:$28 sps:$4 sm:$0xff]  }
  0x44   :  { %1921 = vmatpush3.bf16.msra.mxu0 %v2358_v3  ;;  %646 = vmatprep.mubr.bf16.mxu0 %v2255_v63  ;;  %v2280_v63 = vld [vmem:[%s3024_s0 + $0xe4] ss:$28 sps:$4 sm:$0xff]  }
  0x45   :  { %1901 = vmatpush3.bf16.msra.mxu1 %v2448_v18  ;;  %1922 = vmatprep.subr.bf16.mxu0 %v2370_v5 }
  0x46   :  { %1902 = vmatprep.subr.bf16.mxu1 %v2460_v20 }
  0x48   :  { %1923 = vmatpush3.bf16.msra.mxu0 %v2382_v7 }
  0x49   :  { %1903 = vmatpush3.bf16.msra.mxu1 %v2472_v22  ;;  %1924 = vmatprep.subr.bf16.mxu0 %v2394_v9 }
  0x4a   :  { %1904 = vmatprep.subr.bf16.mxu1 %v2484_v24 }
  0x4b   :  { %647 = vmatmul.mubr.bf16.gmra.mxu0 %v2257_v32  ;;  %v2277_v32 = vld [vmem:[%s3024_s0 + $0xb8] ss:$28 sps:$4 sm:$0xff]  }
  0x4c   :  { %1925 = vmatpush3.bf16.msra.mxu0 %v2406_v11  ;;  %878 = vmatprep.mubr.bf16.mxu0 %v2263_v33  ;;  %v2283_v33 = vld [vmem:[%s3024_s0 + $0xec] ss:$28 sps:$4 sm:$0xff]  }
  0x4d   :  { %1905 = vmatpush3.bf16.msra.mxu1 %v2496_v26  ;;  %1926 = vmatprep.subr.bf16.mxu0 %v2418_v13 }
  0x4e   :  { %1906 = vmatprep.subr.bf16.mxu1 %v2508_v28 }
  0x50   :  { %1927 = vmatpush3.bf16.msra.mxu0 %v2430_v15 }
  0x51   :  { %1907 = vmatpush3.bf16.msra.mxu1 %v2520_v30  ;;  %1928 = vmatprep.subr.bf16.mxu0 %v2442_v17 }
  0x52   :  { %1948 = vmatprep.subr.bf16.mxu1 %v2545_v36 }
  0x54   :  { %830 = vmatmul.mubr.bf16.vlgmr.msra.gmra.mxu1 %v2258_v34  ;;  %1929 = vmatpush3.bf16.msra.mxu0 %v2454_v19  ;;  %v2281_v34 = vld [vmem:[%s3024_s0 + $0xe8] ss:$28 sps:$4 sm:$0xff]  }
  0x55   :  { %1949 = vmatpush3.bf16.msra.mxu1 %v2556_v38  ;;  %837 = vmatprep.mubr.bf16.mxu1 %v2264_v35  ;;  %v2278_v35 = vld [vmem:[%s3024_s0 + $0xe0] ss:$28 sps:$4 sm:$0xff]  }
  0x56   :  { %1950 = vmatprep.subr.bf16.mxu1 %v2562_v39  ;;  %1930 = vmatprep.subr.bf16.mxu0 %v2466_v21 }
  0x58   :  { %1931 = vmatpush3.bf16.msra.mxu0 %v2478_v23 }
  0x59   :  { %1951 = vmatpush3.bf16.msra.mxu1 %v2569_v40  ;;  %1932 = vmatprep.subr.bf16.mxu0 %v2490_v25 }
  0x5a   :  { %1952 = vmatprep.subr.bf16.mxu1 %v2588_v45 }
  0x5c   :  { %838 = vmatmul.mubr.bf16.gmra.mxu1 %v2266_v41  ;;  %1933 = vmatpush3.bf16.msra.mxu0 %v2502_v27  ;;  %v2284_v41 = vld [vmem:[%s3024_s0 + $0x11c] ss:$28 sps:$4 sm:$0xff]  }
  0x5d   :  { %1953 = vmatpush3.bf16.msra.mxu1 %v2599_v47  ;;  %927 = vmatprep.mubr.bf16.mxu1 %v2272_v42  ;;  %v2286_v42 = vld [vmem:[%s3024_s0 + $0x124] ss:$28 sps:$4 sm:$0xff]  }
  0x5e   :  { %1954 = vmatprep.subr.bf16.mxu1 %v2605_v48  ;;  %1934 = vmatprep.subr.bf16.mxu0 %v2514_v29 }
  0x60   :  { %1935 = vmatpush3.bf16.msra.mxu0 %v2526_v31 }
  0x61   :  { %1955 = vmatpush3.bf16.msra.mxu1 %v2612_v49  ;;  %2164 = vmatprep.subr.bf16.mxu0 %v2550_v37 }
  0x62   :  { %1956 = vmatprep.subr.bf16.mxu1 %v2622_v51 }
  0x63   :  { %879 = vmatmul.mubr.bf16.vlgmr.msra.gmra.mxu0 %v2261_v43  ;;  %v2289_v43 = vld [vmem:[%s3024_s0 + $0x120] ss:$28 sps:$4 sm:$0xff]  }
  0x64   :  { %886 = vmatprep.mubr.bf16.mxu0 %v2267_v44  ;;  %2165 = vmatpush3.bf16.msra.mxu0 %v2550_v37  ;;  %v2288_v44 = vld [vmem:[%s3024_s0 + $0x118] ss:$28 sps:$4 sm:$0xff]  }
  0x65   :  { %1957 = vmatpush3.bf16.msra.mxu1 %v2632_v53  ;;  %2166 = vmatprep.subr.bf16.mxu0 %v2593_v46 }
  0x66   :  { %1958 = vmatprep.subr.bf16.mxu1 %v2638_v54 }
  0x68   :  { %2167 = vmatpush3.bf16.msra.mxu0 %v2593_v46 }
  0x69   :  { %1959 = vmatpush3.bf16.msra.mxu1 %v2647_v55  ;;  %1980 = vmatprep.subr.bf16.mxu0 %v2341_v0 }
  0x6a   :  { %1960 = vmatprep.subr.bf16.mxu1 %v2653_v56 }
  0x6b   :  { %887 = vmatmul.mubr.bf16.gmra.mxu0 %v2269_v50  ;;  %v2290_v50 = vld [vmem:[%s3024_s0 + $0xf8] ss:$28 sps:$4 sm:$0xff]  }
  0x6c   :  { %2168 = vmatprep.mubr.msk.bf16.mxu0 %vm501_vm0, %v2273_v52  ;;  %v2294_v52 = vld [vmem:[%s3024_s0 + $0xf4] ss:$28 sps:$4 sm:$0xff]  }
  0x6d   :  { %1961 = vmatpush3.bf16.msra.mxu1 %v2664_v58 }
  0x6e   :  { %1962 = vmatprep.subr.bf16.mxu1 %v2670_v59 }
  0x71   :  { %1963 = vmatpush3.bf16.msra.mxu1 %v2681_v61 }
  0x72   :  { %2008 = vmatprep.subr.bf16.mxu1 %v2346_v1 }
  0x73   :  { %2169 = vmatmul.mubr.msk.bf16.vlgmr.msra.gmra.mxu0 %vm501_vm0, %v2274_v60 }
  0x74   :  { %928 = vmatmul.mubr.bf16.vlgmr.msra.gmra.mxu1 %v2270_v57  ;;  %1981 = vmatpush3.bf16.msra.mxu0 %v2352_v2  ;;  %v2291_v57 = vld [vmem:[%s3024_s0 + $0x130] ss:$28 sps:$4 sm:$0xff]  }
  0x75   :  { %2009 = vmatpush3.bf16.msra.mxu1 %v2358_v3  ;;  %1982 = vmatprep.subr.bf16.mxu0 %v2364_v4 }
  0x76   :  { %2010 = vmatprep.subr.bf16.mxu1 %v2370_v5  ;;  %935 = vmatprep.mubr.bf16.mxu1 %v2275_v62 }
  0x77   :  { %1122 = vmatprep.mubr.bf16.mxu0 %v2280_v63 }
  0x78   :  { %1983 = vmatpush3.bf16.msra.mxu0 %v2376_v6 }
  0x79   :  { %2011 = vmatpush3.bf16.msra.mxu1 %v2382_v7  ;;  %1984 = vmatprep.subr.bf16.mxu0 %v2388_v8 }
  0x7a   :  { %2012 = vmatprep.subr.bf16.mxu1 %v2394_v9 }
  0x7c   :  { %936 = vmatmul.mubr.bf16.gmra.mxu1 %v2277_v32  ;;  %1985 = vmatpush3.bf16.msra.mxu0 %v2400_v10 }
  0x7d   :  { %2013 = vmatpush3.bf16.msra.mxu1 %v2406_v11  ;;  %1171 = vmatprep.mubr.bf16.mxu1 %v2283_v33 }
  0x7e   :  { %2014 = vmatprep.subr.bf16.mxu1 %v2418_v13  ;;  %1986 = vmatprep.subr.bf16.mxu0 %v2412_v12 }
  0x80   :  { %1987 = vmatpush3.bf16.msra.mxu0 %v2424_v14 }
  0x81   :  { %2015 = vmatpush3.bf16.msra.mxu1 %v2430_v15  ;;  %1988 = vmatprep.subr.bf16.mxu0 %v2436_v16 }
  0x82   :  { %2016 = vmatprep.subr.bf16.mxu1 %v2442_v17 }
  0x84   :  { %1989 = vmatpush3.bf16.msra.mxu0 %v2448_v18 }
  0x85   :  { %2017 = vmatpush3.bf16.msra.mxu1 %v2454_v19  ;;  %1990 = vmatprep.subr.bf16.mxu0 %v2460_v20 }
  0x86   :  { %2018 = vmatprep.subr.bf16.mxu1 %v2466_v21 }
  0x88   :  { %1991 = vmatpush3.bf16.msra.mxu0 %v2472_v22 }
  0x89   :  { %2019 = vmatpush3.bf16.msra.mxu1 %v2478_v23  ;;  %1992 = vmatprep.subr.bf16.mxu0 %v2484_v24 }
  0x8a   :  { %2020 = vmatprep.subr.bf16.mxu1 %v2490_v25 }
  0x8c   :  { %1993 = vmatpush3.bf16.msra.mxu0 %v2496_v26 }
  0x8d   :  { %2021 = vmatpush3.bf16.msra.mxu1 %v2502_v27  ;;  %1994 = vmatprep.subr.bf16.mxu0 %v2508_v28 }
  0x8e   :  { %2022 = vmatprep.subr.bf16.mxu1 %v2514_v29 }
  0x90   :  { %1995 = vmatpush3.bf16.msra.mxu0 %v2520_v30 }
  0x91   :  { %2023 = vmatpush3.bf16.msra.mxu1 %v2526_v31  ;;  %2036 = vmatprep.subr.bf16.mxu0 %v2545_v36 }
  0x92   :  { %2172 = vmatprep.subr.bf16.mxu1 %v2550_v37 }
  0x93   :  { %1123 = vmatmul.mubr.bf16.vlgmr.msra.gmra.mxu0 %v2278_v35 }
  0x94   :  { %1172 = vmatmul.mubr.bf16.vlgmr.msra.gmra.mxu1 %v2281_v34  ;;  %2037 = vmatpush3.bf16.msra.mxu0 %v2556_v38 }
  0x95   :  { %2173 = vmatpush3.bf16.msra.mxu1 %v2550_v37  ;;  %1130 = vmatprep.mubr.bf16.mxu0 %v2284_v41 }
  0x96   :  { %2038 = vmatprep.subr.bf16.mxu0 %v2562_v39  ;;  %1179 = vmatprep.mubr.bf16.mxu1 %v2286_v42 }
  0x97   :  { %2174 = vmatprep.subr.bf16.mxu1 %v2593_v46 }
  0x98   :  { %2039 = vmatpush3.bf16.msra.mxu0 %v2569_v40 }
  0x99   :  { %2175 = vmatpush3.bf16.msra.mxu1 %v2593_v46  ;;  %2040 = vmatprep.subr.bf16.mxu0 %v2588_v45 }
  0x9a   :  { %2068 = vmatprep.subr.bf16.mxu1 %v2341_v0  ;;  %v2300_v0 = vld [vmem:[%s3024_s0 + $0x154] ss:$28 sps:$4 sm:$0xff]  }
  0x9b   :  { %1131 = vmatmul.mubr.bf16.gmra.mxu0 %v2288_v44 }
  0x9c   :  { %1180 = vmatmul.mubr.bf16.gmra.mxu1 %v2289_v43  ;;  %2041 = vmatpush3.bf16.msra.mxu0 %v2599_v47 }
  0x9d   :  { %2176 = vmatprep.mubr.msk.bf16.mxu1 %vm501_vm0, %v2290_v50  ;;  %1220 = vmatprep.mubr.bf16.mxu0 %v2294_v52 }
  0x9e   :  { %2042 = vmatprep.subr.bf16.mxu0 %v2605_v48 }
  0xa0   :  { %2043 = vmatpush3.bf16.msra.mxu0 %v2612_v49 }
  0xa1   :  { %2044 = vmatprep.subr.bf16.mxu0 %v2622_v51 }
  0xa4   :  { %2177 = vmatmul.mubr.msk.bf16.vlgmr.msra.gmra.mxu1 %vm501_vm0, %v2291_v57  ;;  %2045 = vmatpush3.bf16.msra.mxu0 %v2632_v53 }
  0xa5   :  { %2069 = vmatpush3.bf16.msra.mxu1 %v2352_v2  ;;  %1415 = vmatprep.mubr.bf16.mxu1 %v2300_v0  ;;  %v2292_v2 = vld [vmem:[%s3024_s0 + $0xf0] ss:$28 sps:$4 sm:$0xff]  }
  0xa6   :  { %2070 = vmatprep.subr.bf16.mxu1 %v2364_v4  ;;  %2046 = vmatprep.subr.bf16.mxu0 %v2638_v54  ;;  %v2295_v4 = vld [vmem:[%s3024_s0 + $0x12c] ss:$28 sps:$4 sm:$0xff]  }
  0xa8   :  { %2047 = vmatpush3.bf16.msra.mxu0 %v2647_v55 }
  0xa9   :  { %2071 = vmatpush3.bf16.msra.mxu1 %v2376_v6  ;;  %2048 = vmatprep.subr.bf16.mxu0 %v2653_v56  ;;  %v2304_v6 = vld [vmem:[%s3024_s0 + $0x18c] ss:$28 sps:$4 sm:$0xff]  }
  0xaa   :  { %2072 = vmatprep.subr.bf16.mxu1 %v2388_v8  ;;  %v2312_v8 = vld [vmem:[%s3024_s0 + $0x164] ss:$28 sps:$4 sm:$0xff]  }
  0xac   :  { %2049 = vmatpush3.bf16.msra.mxu0 %v2664_v58 }
  0xad   :  { %2073 = vmatpush3.bf16.msra.mxu1 %v2400_v10  ;;  %2050 = vmatprep.subr.bf16.mxu0 %v2670_v59  ;;  %v2307_v10 = vld [vmem:[%s3024_s0 + $0x194] ss:$28 sps:$4 sm:$0xff]  }
  0xae   :  { %2074 = vmatprep.subr.bf16.mxu1 %v2412_v12  ;;  %v2313_v12 = vld [vmem:[%s3024_s0 + $0x168] ss:$28 sps:$4 sm:$0xff]  }
  0xb0   :  { %2051 = vmatpush3.bf16.msra.mxu0 %v2681_v61 }
  0xb1   :  { %2075 = vmatpush3.bf16.msra.mxu1 %v2424_v14  ;;  %2096 = vmatprep.subr.bf16.mxu0 %v2346_v1  ;;  %v2297_v1 = vld [vmem:[%s3024_s0 + $0x128] ss:$28 sps:$4 sm:$0xff]   ;;  %v2314_v14 = vld [vmem:[%s3024_s0 + $0x1a0] ss:$28 sps:$4 sm:$0xff]  }
  0xb2   :  { %2076 = vmatprep.subr.bf16.mxu1 %v2436_v16 }
  0xb3   :  { %1221 = vmatmul.mubr.bf16.vlgmr.msra.gmra.mxu0 %v2292_v2 }
  0xb4   :  { %2097 = vmatpush3.bf16.msra.mxu0 %v2358_v3  ;;  %1228 = vmatprep.mubr.bf16.mxu0 %v2295_v4  ;;  %v2303_v3 = vld [vmem:[%s3024_s0 + $0x15c] ss:$28 sps:$4 sm:$0xff]  }
  0xb5   :  { %2077 = vmatpush3.bf16.msra.mxu1 %v2448_v18  ;;  %2098 = vmatprep.subr.bf16.mxu0 %v2370_v5  ;;  %v2298_v5 = vld [vmem:[%s3024_s0 + $0x150] ss:$28 sps:$4 sm:$0xff]  }
  0xb6   :  { %2078 = vmatprep.subr.bf16.mxu1 %v2460_v20 }
  0xb8   :  { %2099 = vmatpush3.bf16.msra.mxu0 %v2382_v7  ;;  %v2306_v7 = vld [vmem:[%s3024_s0 + $0x188] ss:$28 sps:$4 sm:$0xff]  }
  0xb9   :  { %2079 = vmatpush3.bf16.msra.mxu1 %v2472_v22  ;;  %2100 = vmatprep.subr.bf16.mxu0 %v2394_v9  ;;  %v2301_v9 = vld [vmem:[%s3024_s0 + $0x158] ss:$28 sps:$4 sm:$0xff]  }
  0xba   :  { %2080 = vmatprep.subr.bf16.mxu1 %v2484_v24  ;;  %v2317_v24 = vld [vmem:[%s3024_s0 + $0x198] ss:$28 sps:$4 sm:$0xff]  }
  0xbb   :  { %1229 = vmatmul.mubr.bf16.gmra.mxu0 %v2297_v1 }
  0xbc   :  { %2101 = vmatpush3.bf16.msra.mxu0 %v2406_v11  ;;  %1464 = vmatprep.mubr.bf16.mxu0 %v2303_v3  ;;  %v2309_v11 = vld [vmem:[%s3024_s0 + $0x190] ss:$28 sps:$4 sm:$0xff]  }
  0xbd   :  { %2081 = vmatpush3.bf16.msra.mxu1 %v2496_v26  ;;  %2102 = vmatprep.subr.bf16.mxu0 %v2418_v13  ;;  %v2310_v13 = vld [vmem:[%s3024_s0 + $0x160] ss:$28 sps:$4 sm:$0xff]  }
  0xbe   :  { %2082 = vmatprep.subr.bf16.mxu1 %v2508_v28 }
  0xc0   :  { %2103 = vmatpush3.bf16.msra.mxu0 %v2430_v15  ;;  %v2315_v15 = vld [vmem:[%s3024_s0 + $0x19c] ss:$28 sps:$4 sm:$0xff]  }
  0xc1   :  { %2083 = vmatpush3.bf16.msra.mxu1 %v2520_v30  ;;  %2104 = vmatprep.subr.bf16.mxu0 %v2442_v17 }
  0xc2   :  { %2124 = vmatprep.subr.bf16.mxu1 %v2545_v36 }
  0xc4   :  { %1416 = vmatmul.mubr.bf16.vlgmr.msra.gmra.mxu1 %v2298_v5  ;;  %2105 = vmatpush3.bf16.msra.mxu0 %v2454_v19 }
  0xc5   :  { %2125 = vmatpush3.bf16.msra.mxu1 %v2556_v38  ;;  %1423 = vmatprep.mubr.bf16.mxu1 %v2304_v6 }
  0xc6   :  { %2126 = vmatprep.subr.bf16.mxu1 %v2562_v39  ;;  %2106 = vmatprep.subr.bf16.mxu0 %v2466_v21 }
  0xc8   :  { %2107 = vmatpush3.bf16.msra.mxu0 %v2478_v23 }
  0xc9   :  { %2127 = vmatpush3.bf16.msra.mxu1 %v2569_v40  ;;  %2108 = vmatprep.subr.bf16.mxu0 %v2490_v25 }
  0xca   :  { %2128 = vmatprep.subr.bf16.mxu1 %v2588_v45 }
  0xcc   :  { %1424 = vmatmul.mubr.bf16.gmra.mxu1 %v2306_v7  ;;  %2109 = vmatpush3.bf16.msra.mxu0 %v2502_v27 }
  0xcd   :  { %2129 = vmatpush3.bf16.msra.mxu1 %v2599_v47  ;;  %1513 = vmatprep.mubr.bf16.mxu1 %v2312_v8 }
  0xce   :  { %2130 = vmatprep.subr.bf16.mxu1 %v2605_v48  ;;  %2110 = vmatprep.subr.bf16.mxu0 %v2514_v29 }
  0xd0   :  { %2111 = vmatpush3.bf16.msra.mxu0 %v2526_v31 }
  0xd1   :  { %2131 = vmatpush3.bf16.msra.mxu1 %v2612_v49  ;;  %2180 = vmatprep.subr.bf16.mxu0 %v2550_v37 }
  0xd2   :  { %2132 = vmatprep.subr.bf16.mxu1 %v2622_v51 }
  0xd3   :  { %1465 = vmatmul.mubr.bf16.vlgmr.msra.gmra.mxu0 %v2301_v9 }
  0xd4   :  { %1472 = vmatprep.mubr.bf16.mxu0 %v2307_v10  ;;  %2181 = vmatpush3.bf16.msra.mxu0 %v2550_v37 }
  0xd5   :  { %2133 = vmatpush3.bf16.msra.mxu1 %v2632_v53  ;;  %2182 = vmatprep.subr.bf16.mxu0 %v2593_v46 }
  0xd6   :  { %2134 = vmatprep.subr.bf16.mxu1 %v2638_v54 }
  0xd8   :  { %2183 = vmatpush3.bf16.msra.mxu0 %v2593_v46 }
  0xd9   :  { %2135 = vmatpush3.bf16.msra.mxu1 %v2647_v55 }
  0xda   :  { %2136 = vmatprep.subr.bf16.mxu1 %v2653_v56 }
  0xdb   :  { %1473 = vmatmul.mubr.bf16.gmra.mxu0 %v2309_v11 }
  0xdc   :  { %2184 = vmatprep.mubr.msk.bf16.mxu0 %vm501_vm0, %v2313_v12 }
  0xdd   :  { %2137 = vmatpush3.bf16.msra.mxu1 %v2664_v58 }
  0xde   :  { %2138 = vmatprep.subr.bf16.mxu1 %v2670_v59 }
  0xe1   :  { %2139 = vmatpush3.bf16.msra.mxu1 %v2681_v61 }
  0xe3   :  { %v1820_v16 = vpop.f32.mrf.mxu0  ;;  %2185 = vmatmul.mubr.msk.bf16.vlgmr.msra.gmra.mxu0 %vm501_vm0, %v2314_v14 }
  0xe4   :  { %1514 = vmatmul.mubr.bf16.vlgmr.msra.gmra.mxu1 %v2310_v13  ;;  %v1848_v17 = vpop.f32.mrf.mxu1 }
  0xe5   :  { %v1821_v18 = vpop.f32.mrf.mxu0  ;;  %1521 = vmatprep.mubr.bf16.mxu1 %v2315_v15 }
  0xe6   :  { %v1822_v19 = vadd.f32 %v1821_v18, %v1820_v16  ;;  %v1849_v20 = vpop.f32.mrf.mxu1 }
  0xe7   :  { %v1850_v21 = vadd.f32 %v1849_v20, %v1848_v17  ;;  %v1823_v22 = vpop.f32.mrf.mxu0 }
  0xe8   :  { %v1851_v23 = vpop.f32.mrf.mxu1 }
  0xe9   :  { %v592_v25 = vadd.f32 %v1850_v21, %v1822_v19  ;;  %v1824_v26 = vpop.f32.mrf.mxu0 }
  0xea   :  { %v1825_v27 = vadd.f32 %v1824_v26, %v1823_v22  ;;  %v1852_v28 = vpop.f32.mrf.mxu1 }
  0xeb   :  { %v1853_v29 = vadd.f32 %v1852_v28, %v1851_v23  ;;  %v1826_v30 = vpop.f32.mrf.mxu0 }
  0xec   :  { %1522 = vmatmul.mubr.bf16.gmra.mxu1 %v2317_v24  ;;  %v1854_v31 = vpop.f32.mrf.mxu1 }
  0xed   :  { %v595_v36 = vadd.f32 %v1853_v29, %v1825_v27  ;;  %v1827_v37 = vpop.f32.mrf.mxu0 }
  0xee   :  { %v1828_v38 = vadd.f32 %v1827_v37, %v1826_v30  ;;  %v1855_v39 = vpop.f32.mrf.mxu1 }
  0xef   :  { %v1856_v40 = vadd.f32 %v1855_v39, %v1854_v31  ;;  %v1829_v45 = vpop.f32.mrf.mxu0 }
  0xf0   :  { %v1857_v46 = vpop.f32.mrf.mxu1 }
  0xf1   :  { %v600_v47 = vadd.f32 %v1856_v40, %v1828_v38  ;;  %v1830_v48 = vpop.f32.mrf.mxu0 }
  0xf2   :  { %v1831_v49 = vadd.f32 %v1830_v48, %v1829_v45  ;;  %v1858_v51 = vpop.f32.mrf.mxu1 }
  0xf3   :  { %v1859_v53 = vadd.f32 %v1858_v51, %v1857_v46 }
  0xf4   :  { %v2162_v55 = vpop.f32.mrf.mxu1 }
  0xf5   :  { %v603_v54 = vadd.f32 %v1859_v53, %v1831_v49 }
  0xf6   :  { %v689_v58 = vpop.f32.mrf.mxu1 }
  0xf8   :  { %v2163_v63 = vpop.f32.mrf.mxu1 }
  0xfa   :  { %v692_v42 = vpop.f32.mrf.mxu1 }
 0x103   :  { %v1876_v56 = vpop.f32.mrf.mxu0 }
 0x105   :  { %v1877_v59 = vpop.f32.mrf.mxu0 }
 0x106   :  { %v1878_v61 = vadd.f32 %v1877_v59, %v1876_v56 }
 0x107   :  { %v1879_v60 = vpop.f32.mrf.mxu0 }
 0x108   :  { %v641_v62 = vadd.f32 %v1878_v61, %v592_v25 }
 0x109   :  { %v1880_v32 = vpop.f32.mrf.mxu0 }
 0x10a   :  { %v1881_v33 = vadd.f32 %v1880_v32, %v1879_v60  ;;  %v2972_v34 = vadd.f32 %v689_v58, %v641_v62 }
 0x10b   :  { %v1882_v35 = vpop.f32.mrf.mxu0 }
 0x10c   :  { %v644_v41 = vadd.f32 %v1881_v33, %v595_v36 }
 0x10d   :  { %v1883_v43 = vpop.f32.mrf.mxu0 }
 0x10e   :  { %v1884_v44 = vadd.f32 %v1883_v43, %v1882_v35  ;;  %v2974_v50 = vadd.f32 %v692_v42, %v644_v41 }
 0x10f   :  { %v1885_v52 = vpop.f32.mrf.mxu0 }
 0x110   :  { %v649_v57 = vadd.f32 %v1884_v44, %v600_v47 }
 0x111   :  { %v1886_v0 = vpop.f32.mrf.mxu0 }
 0x112   :  { %v2976_v2 = vadd.f32 %v2162_v55, %v649_v57  ;;  %v1887_v4 = vadd.f32 %v1886_v0, %v1885_v52 }
 0x114   :  { %v1908_v1 = vpop.f32.mrf.mxu1  ;;  %v652_v3 = vadd.f32 %v1887_v4, %v603_v54 }
 0x116   :  { %v1909_v5 = vpop.f32.mrf.mxu1  ;;  %v2978_v7 = vadd.f32 %v2163_v63, %v652_v3 }
 0x117   :  { %v1910_v6 = vadd.f32 %v1909_v5, %v1908_v1 }
 0x118   :  { %3029 = vst [vmem:[#allocation2_spill] sm:$0xff] %v2978_v7  ;;  %v1911_v8 = vpop.f32.mrf.mxu1 }
 0x11a   :  { %v1912_v9 = vpop.f32.mrf.mxu1 }
 0x11b   :  { %v1913_v10 = vadd.f32 %v1912_v9, %v1911_v8 }
 0x11c   :  { %v1914_v11 = vpop.f32.mrf.mxu1 }
 0x11e   :  { %v1915_v12 = vpop.f32.mrf.mxu1 }
 0x11f   :  { %v1916_v13 = vadd.f32 %v1915_v12, %v1914_v11 }
 0x120   :  { %v1917_v14 = vpop.f32.mrf.mxu1 }
 0x122   :  { %v1918_v15 = vpop.f32.mrf.mxu1 }
 0x123   :  { %v1919_v16 = vadd.f32 %v1918_v15, %v1917_v14  ;;  %v1936_v17 = vpop.f32.mrf.mxu0 }
 0x125   :  { %v1937_v18 = vpop.f32.mrf.mxu0 }
 0x126   :  { %v1938_v19 = vadd.f32 %v1937_v18, %v1936_v17 }
 0x127   :  { %v1939_v20 = vpop.f32.mrf.mxu0 }
 0x128   :  { %v881_v21 = vadd.f32 %v1938_v19, %v1910_v6 }
 0x129   :  { %v1940_v22 = vpop.f32.mrf.mxu0 }
 0x12a   :  { %v1941_v23 = vadd.f32 %v1940_v22, %v1939_v20 }
 0x12b   :  { %v1942_v24 = vpop.f32.mrf.mxu0 }
 0x12c   :  { %v884_v25 = vadd.f32 %v1941_v23, %v1913_v10 }
 0x12d   :  { %v1943_v26 = vpop.f32.mrf.mxu0 }
 0x12e   :  { %v1944_v27 = vadd.f32 %v1943_v26, %v1942_v24 }
 0x12f   :  { %v1945_v28 = vpop.f32.mrf.mxu0 }
 0x130   :  { %v889_v29 = vadd.f32 %v1944_v27, %v1916_v13 }
 0x131   :  { %v1946_v30 = vpop.f32.mrf.mxu0 }
 0x132   :  { %v1947_v31 = vadd.f32 %v1946_v30, %v1945_v28 }
 0x133   :  { %v2170_v37 = vpop.f32.mrf.mxu0 }
 0x134   :  { %v1964_v36 = vpop.f32.mrf.mxu1  ;;  %v892_v38 = vadd.f32 %v1947_v31, %v1919_v16 }
 0x135   :  { %v978_v45 = vpop.f32.mrf.mxu0 }
 0x136   :  { %v1965_v39 = vpop.f32.mrf.mxu1 }
 0x137   :  { %v1966_v40 = vadd.f32 %v1965_v39, %v1964_v36  ;;  %v2171_v48 = vpop.f32.mrf.mxu0 }
 0x138   :  { %v1967_v46 = vpop.f32.mrf.mxu1 }
 0x139   :  { %v930_v47 = vadd.f32 %v1966_v40, %v881_v21  ;;  %v981_v55 = vpop.f32.mrf.mxu0 }
 0x13a   :  { %v1968_v49 = vpop.f32.mrf.mxu1 }
 0x13b   :  { %v1969_v51 = vadd.f32 %v1968_v49, %v1967_v46  ;;  %v2980_v53 = vadd.f32 %v978_v45, %v930_v47 }
 0x13c   :  { %v1970_v54 = vpop.f32.mrf.mxu1 }
 0x13d   :  { %v933_v58 = vadd.f32 %v1969_v51, %v884_v25 }
 0x13e   :  { %v1971_v59 = vpop.f32.mrf.mxu1 }
 0x13f   :  { %v1972_v61 = vadd.f32 %v1971_v59, %v1970_v54  ;;  %v2984_v60 = vadd.f32 %v981_v55, %v933_v58 }
 0x140   :  { %v1973_v62 = vpop.f32.mrf.mxu1 }
 0x141   :  { %v938_v63 = vadd.f32 %v1972_v61, %v889_v29 }
 0x142   :  { %v1974_v33 = vpop.f32.mrf.mxu1 }
 0x143   :  { %v2988_v35 = vadd.f32 %v2170_v37, %v938_v63  ;;  %v1975_v41 = vadd.f32 %v1974_v33, %v1973_v62 }
 0x145   :  { %v941_v43 = vadd.f32 %v1975_v41, %v892_v38 }
 0x147   :  { %v2992_v44 = vadd.f32 %v2171_v48, %v941_v43 }
 0x149   :  { %3030 = vst [vmem:[#allocation3_spill] sm:$0xff] %v2992_v44 }
 0x153   :  { %v1996_v57 = vpop.f32.mrf.mxu0 }
 0x154   :  { %v2024_v0 = vpop.f32.mrf.mxu1 }
 0x155   :  { %v1997_v4 = vpop.f32.mrf.mxu0 }
 0x156   :  { %v2025_v1 = vpop.f32.mrf.mxu1  ;;  %v1998_v47 = vadd.f32 %v1997_v4, %v1996_v57 }
 0x157   :  { %v1999_v3 = vpop.f32.mrf.mxu0  ;;  %v2026_v48 = vadd.f32 %v2025_v1, %v2024_v0 }
 0x158   :  { %v2027_v5 = vpop.f32.mrf.mxu1 }
 0x159   :  { %v2000_v6 = vpop.f32.mrf.mxu0  ;;  %v1174_v58 = vadd.f32 %v2026_v48, %v1998_v47 }
 0x15a   :  { %v2028_v8 = vpop.f32.mrf.mxu1  ;;  %v2001_v59 = vadd.f32 %v2000_v6, %v1999_v3 }
 0x15b   :  { %v2002_v9 = vpop.f32.mrf.mxu0  ;;  %v2029_v61 = vadd.f32 %v2028_v8, %v2027_v5 }
 0x15c   :  { %v2030_v10 = vpop.f32.mrf.mxu1 }
 0x15d   :  { %v2003_v11 = vpop.f32.mrf.mxu0  ;;  %v1177_v42 = vadd.f32 %v2029_v61, %v2001_v59 }
 0x15e   :  { %v2031_v12 = vpop.f32.mrf.mxu1  ;;  %v2004_v32 = vadd.f32 %v2003_v11, %v2002_v9 }
 0x15f   :  { %v2005_v13 = vpop.f32.mrf.mxu0  ;;  %v2032_v56 = vadd.f32 %v2031_v12, %v2030_v10 }
 0x160   :  { %v2033_v14 = vpop.f32.mrf.mxu1 }
 0x161   :  { %v2006_v15 = vpop.f32.mrf.mxu0  ;;  %v1182_v6 = vadd.f32 %v2032_v56, %v2004_v32 }
 0x162   :  { %v2034_v16 = vpop.f32.mrf.mxu1  ;;  %v2007_v8 = vadd.f32 %v2006_v15, %v2005_v13 }
 0x164   :  { %v2996_v18 = vpop.f32.mrf.mxu1 }
 0x166   :  { %v1271_v20 = vpop.f32.mrf.mxu1 }
 0x168   :  { %v2998_v22 = vpop.f32.mrf.mxu1 }
 0x16a   :  { %v1274_v24 = vpop.f32.mrf.mxu1 }
 0x173   :  { %v2052_v17 = vpop.f32.mrf.mxu0 }
 0x175   :  { %v2053_v19 = vpop.f32.mrf.mxu0 }
 0x176   :  { %v2054_v51 = vadd.f32 %v2053_v19, %v2052_v17 }
 0x177   :  { %v2055_v21 = vpop.f32.mrf.mxu0 }
 0x178   :  { %v1223_v63 = vadd.f32 %v2054_v51, %v1174_v58 }
 0x179   :  { %v2056_v23 = vpop.f32.mrf.mxu0 }
 0x17a   :  { %v2057_v33 = vadd.f32 %v2056_v23, %v2055_v21  ;;  %v1272_v0 = vadd.f32 %v1271_v20, %v1223_v63  ;;  %v2035_v21 = vadd.f32 %v2034_v16, %v2033_v14 }
 0x17b   :  { %v2058_v25 = vpop.f32.mrf.mxu0 }
 0x17c   :  { %v1226_v4 = vadd.f32 %v2057_v33, %v1177_v42  ;;  %v3031_v42 = vmax.f32 %v2972_v34, %v2980_v53  ;;  %v3032_v34 = vmax.f32 %v2974_v50, %v2984_v60 }
 0x17d   :  { %v2059_v27 = vpop.f32.mrf.mxu0 }
 0x17e   :  { %v2060_v1 = vadd.f32 %v2059_v27, %v2058_v25  ;;  %v1275_v9 = vadd.f32 %v1274_v24, %v1226_v4  ;;  %v1286_v20 = vmax.f32 %v3031_v42, %v1272_v0  ;;  %v1185_v27 = vadd.f32 %v2035_v21, %v2007_v8  ;;  %v3034_v0 = vld [vmem:[#allocation2_spill] sm:$0xff] }
 0x17f   :  { %v2061_v29 = vpop.f32.mrf.mxu0 }
 0x180   :  { %v1231_v10 = vadd.f32 %v2060_v1, %v1182_v6  ;;  %v1287_v53 = vmax.f32 %v3032_v34, %v1275_v9 }
 0x181   :  { %v2062_v31 = vpop.f32.mrf.mxu0 }
 0x182   :  { %v2063_v11 = vadd.f32 %v2062_v31, %v2061_v29  ;;  %v1280_v16 = vadd.f32 %v2996_v18, %v1231_v10  ;;  %v3033_v18 = vmax.f32 %v2976_v2, %v2988_v35 }
 0x184   :  { %v2084_v26 = vpop.f32.mrf.mxu1  ;;  %v1234_v24 = vadd.f32 %v2063_v11, %v1185_v27 }
 0x186   :  { %v2085_v28 = vpop.f32.mrf.mxu1  ;;  %v1283_v58 = vadd.f32 %v2998_v22, %v1234_v24 }
 0x187   :  { %v2086_v7 = vadd.f32 %v2085_v28, %v2084_v26  ;;  %v1784_v28 = vld [vmem:[%s3025_s2] ss:$0 sm:$0xff] }
 0x188   :  { %v2087_v30 = vpop.f32.mrf.mxu1 }
 0x18a   :  { %v2088_v36 = vpop.f32.mrf.mxu1 }
 0x18c   :  { %v2090_v38 = vpop.f32.mrf.mxu1 }
 0x18e   :  { %v2091_v45 = vpop.f32.mrf.mxu1 }
 0x18f   :  { %v2092_v13 = vadd.f32 %v2091_v45, %v2090_v38 }
 0x190   :  { %v2093_v54 = vpop.f32.mrf.mxu1 }
 0x192   :  { %v2094_v41 = vpop.f32.mrf.mxu1 }
 0x193   :  { %v2112_v37 = vpop.f32.mrf.mxu0  ;;  %v2095_v38 = vadd.f32 %v2094_v41, %v2093_v54  ;;  %v3035_v54 = vld [vmem:[#allocation3_spill] sm:$0xff] }
 0x194   :  { %v3036_v41 = vmax.f32 %v3034_v0, %v3035_v54 }
 0x195   :  { %v2113_v39 = vpop.f32.mrf.mxu0 }
 0x196   :  { %v2114_v43 = vadd.f32 %v2113_v39, %v2112_v37  ;;  %v2089_v37 = vadd.f32 %v2088_v36, %v2087_v30  ;;  %v1289_v4 = vmax.f32 %v3036_v41, %v1283_v58 }
 0x197   :  { %v2115_v40 = vpop.f32.mrf.mxu0 }
 0x198   :  { %v1467_v19 = vadd.f32 %v2114_v43, %v2086_v7 }
 0x199   :  { %v2116_v46 = vpop.f32.mrf.mxu0 }
 0x19a   :  { %v2117_v47 = vadd.f32 %v2116_v46, %v2115_v40 }
 0x19b   :  { %v2118_v49 = vpop.f32.mrf.mxu0 }
 0x19c   :  { %v1470_v25 = vadd.f32 %v2117_v47, %v2089_v37 }
 0x19d   :  { %v2119_v55 = vpop.f32.mrf.mxu0 }
 0x19e   :  { %v2120_v7 = vadd.f32 %v2119_v55, %v2118_v49  ;;  %v1288_v55 = vmax.f32 %v3033_v18, %v1280_v16 }
 0x19f   :  { %v2121_v62 = vpop.f32.mrf.mxu0 }
 0x1a0   :  { %v1475_v30 = vadd.f32 %v2120_v7, %v2092_v13 }
 0x1a1   :  { %v2122_v52 = vpop.f32.mrf.mxu0 }
 0x1a2   :  { %v2123_v31 = vadd.f32 %v2122_v52, %v2121_v62 }
 0x1a3   :  { %v2186_v57 = vpop.f32.mrf.mxu0 }
 0x1a4   :  { %v2140_v44 = vpop.f32.mrf.mxu1  ;;  %v1478_v61 = vadd.f32 %v2123_v31, %v2095_v38 }
 0x1a5   :  { %v1564_v5 = vpop.f32.mrf.mxu0 }
 0x1a6   :  { %v2141_v17 = vpop.f32.mrf.mxu1 }
 0x1a7   :  { %v2142_v3 = vadd.f32 %v2141_v17, %v2140_v44  ;;  %v2187_v48 = vpop.f32.mrf.mxu0 }
 0x1a8   :  { %v2143_v23 = vpop.f32.mrf.mxu1 }
 0x1a9   :  { %v1516_v39 = vadd.f32 %v2142_v3, %v1467_v19  ;;  %v1567_v32 = vpop.f32.mrf.mxu0 }
 0x1aa   :  { %v2144_v12 = vpop.f32.mrf.mxu1 }
 0x1ab   :  { %v2145_v26 = vadd.f32 %v2144_v12, %v2143_v23  ;;  %v1565_v44 = vadd.f32 %v1564_v5, %v1516_v39 }
 0x1ac   :  { %v2146_v56 = vpop.f32.mrf.mxu1 }
 0x1ad   :  { %v1579_v14 = vmax.f32 %v1286_v20, %v1565_v44  ;;  %v1519_v15 = vadd.f32 %v2145_v26, %v1470_v25 }
 0x1ae   :  { %v2147_v29 = vpop.f32.mrf.mxu1 }
 0x1af   :  { %v2148_v36 = vadd.f32 %v2147_v29, %v2146_v56  ;;  %v1568_v40 = vadd.f32 %v1567_v32, %v1519_v15  ;;  %v1590_v45 = vadd.f32 %v1784_v28, %v1579_v14 }
 0x1b0   :  { %v2149_v46 = vpop.f32.mrf.mxu1 }
 0x1b1   :  { %v1524_v49 = vadd.f32 %v2148_v36, %v1475_v30  ;;  %v1580_v51 = vmax.f32 %v1287_v53, %v1568_v40  ;;  %v1594_v33 = vmax.f32 %v1590_v45, 0.0 }
 0x1b2   :  { %v2150_v59 = vpop.f32.mrf.mxu1 }
 0x1b3   :  { %v1573_v63 = vadd.f32 %v2186_v57, %v1524_v49  ;;  %v1591_v50 = vadd.f32 %v1784_v28, %v1580_v51  ;;  %v2151_v60 = vadd.f32 %v2150_v59, %v2149_v46 }
 0x1b5   :  { %v1581_v52 = vmax.f32 %v1288_v55, %v1573_v63  ;;  %v1595_v62 = vmax.f32 %v1591_v50, 0.0  ;;  %v1527_v43 = vadd.f32 %v2151_v60, %v1478_v61 }
 0x1b7   :  { %v1796_v1 = vpack.c.bf16 %v1595_v62, %v1594_v33  ;;  %v1576_v17 = vadd.f32 %v2187_v48, %v1527_v43  ;;  %v1592_v19 = vadd.f32 %v1784_v28, %v1581_v52 }
 0x1b9   :  { %1797 = vst [vmem:[%s3026_s3] sm:$0xff] %v1796_v1   ;;  %v1582_v2 = vmax.f32 %v1289_v4, %v1576_v17  ;;  %v1596_v22 = vmax.f32 %v1592_v19, 0.0 }
 0x1bb   :  { %v1593_v35 = vadd.f32 %v1784_v28, %v1582_v2 }
 0x1bd   :  { %v1597_v57 = vmax.f32 %v1593_v35, 0.0 }
 0x1bf   :  { %v1801_v47 = vpack.c.bf16 %v1597_v57, %v1596_v22 }
 0x1c1   :  { %1803 = vst [vmem:[%s3026_s3 + $0x8] sm:$0xff] %v1801_v47  }

// kernel: net_forward.5
= control target key start
LH: loop header
LB: loop body
LE: loop exit
PB: predicated region body
PF: predicated region fallthrough
CT: control target
= control target key end

     0   :  { %v809_v2 = vmov 0.0   ;;  %v86_v10 = vlaneseq  ;;  %v810_v14 = vmov 1966171168   ;;  %s1031_s0 = inlined_call_operand.vmem [shape: bf16[2,256], index: 0, kind: input, shape index: {}]   ;;  %s1032_s1 = inlined_call_operand.vmem [shape: bf16[256,128], index: 1, kind: input, shape index: {}]   ;;  %s1033_s2 = inlined_call_operand.vmem [shape: f32[1,128], index: 2, kind: input, shape index: {}]   ;;  %s1034_s3 = inlined_call_operand.vmem [shape: bf16[128,128], index: 3, kind: input, shape index: {}]   ;;  %s1035_s4 = inlined_call_operand.vmem [shape: f32[1,128], index: 4, kind: input, shape index: {}]   ;;  %s1036_s5 = inlined_call_operand.vmem [shape: bf16[128,128], index: 5, kind: input, shape index: {}]   ;;  %s1037_s6 = inlined_call_operand.vmem [shape: f32[1,128], index: 6, kind: input, shape index: {}]   ;;  %s1038_s7 = inlined_call_operand.vmem [shape: bf16[128,128], index: 7, kind: input, shape index: {}]   ;;  %s1039_s8 = inlined_call_operand.vmem [shape: f32[1,128], index: 8, kind: input, shape index: {}]   ;;  %s1040_s9 = inlined_call_operand.hbm [shape: f32[2,128], index: 9, kind: output, shape index: {}]  }
   0x1   :  { %v747_v0 = vld [vmem:[%s1032_s1 + $0x78] sm:$0xff]   ;;  %683 = vmatprep.subr.bf16.mxu1 %v809_v2  ;;  %v749_v3 = vld [vmem:[%s1032_s1 + $0x70] sm:$0xff]   ;;  %v751_v5 = vld [vmem:[%s1032_s1 + $0x68] sm:$0xff]   ;;  %v84_v15 = vunpack.c.l.s4 %v810_v14 }
   0x2   :  { %v748_v1 = vld [vmem:[%s1032_s1 + $0x38] sm:$0xff]   ;;  %634 = vmatprep.subr.bf16.mxu0 %v747_v0  ;;  %v750_v4 = vld [vmem:[%s1032_s1 + $0x30] sm:$0xff]   ;;  %v752_v6 = vld [vmem:[%s1032_s1 + $0x28] sm:$0xff]   ;;  %v87_v16 = vshrl.u32 %v86_v10, 7 }
   0x3   :  { %635 = vmatpush3.bf16.msra.mxu0 %v748_v1  ;;  %v753_v7 = vld [vmem:[%s1032_s1 + $0x60] sm:$0xff]   ;;  %v755_v9 = vld [vmem:[%s1032_s1 + $0x58] sm:$0xff]   ;;  %v757_v12 = vld [vmem:[%s1032_s1 + $0x50] sm:$0xff]   ;;  %v85_v20 = vunpack.c.0.s8 %v84_v15 }
   0x4   :  { %636 = vmatprep.subr.bf16.mxu0 %v749_v3  ;;  %v754_v8 = vld [vmem:[%s1032_s1 + $0x20] sm:$0xff]   ;;  %v756_v11 = vld [vmem:[%s1032_s1 + $0x18] sm:$0xff]   ;;  %v758_v18 = vld [vmem:[%s1032_s1 + $0x10] sm:$0xff]  }
   0x5   :  { %v590_v13 = vld.sshfl [vmem:[%s1031_s0] sm:$0x11 pattern:$0x75316420]  ;;  %v763_v17 = vld [vmem:[%s1034_s3 + $0x38] sm:$0xff]   ;;  %v764_v21 = vld [vmem:[%s1034_s3 + $0x30] sm:$0xff]   ;;  %v88_v24 = vsub.s32 %v85_v20, %v87_v16 }
   0x6   :  { %v82_v19 = vcombine.high %v590_v13, %v590_v13  ;;  %684 = vmatpush3.bf16.msra.mxu1 %v763_v17  ;;  %v759_v22 = vld [vmem:[%s1032_s1 + $0x48] sm:$0xff]   ;;  %v761_v26 = vld [vmem:[%s1032_s1 + $0x40] sm:$0xff]   ;;  %v767_v30 = vld [vmem:[%s1034_s3 + $0x18] sm:$0xff]  }
   0x7   :  { %637 = vmatpush3.bf16.msra.mxu0 %v750_v4  ;;  %685 = vmatprep.subr.bf16.mxu1 %v809_v2  ;;  %v760_v23 = vld [vmem:[%s1032_s1 + $0x8] sm:$0xff]   ;;  %v762_v28 = vld [vmem:[%s1032_s1] sm:$0xff]   ;;  %v89_v31 = vrot.slane %v590_v13, %v88_v24 }
   0x8   :  { %638 = vmatprep.subr.bf16.mxu0 %v751_v5  ;;  %v765_v25 = vld [vmem:[%s1034_s3 + $0x28] sm:$0xff]   ;;  %v96_v27 = vrot.slane %v82_v19, %v88_v24  ;;  %v766_v29 = vld [vmem:[%s1034_s3 + $0x20] sm:$0xff]  }
   0xa   :  { %686 = vmatpush3.bf16.msra.mxu1 %v764_v21  ;;  %227 = vmatprep.mubr.bf16.mxu0 %v96_v27 }
   0xb   :  { %639 = vmatpush3.bf16.msra.mxu0 %v752_v6  ;;  %687 = vmatprep.subr.bf16.mxu1 %v809_v2 }
   0xc   :  { %640 = vmatprep.subr.bf16.mxu0 %v753_v7 }
   0xe   :  { %688 = vmatpush3.bf16.msra.mxu1 %v765_v25 }
   0xf   :  { %641 = vmatpush3.bf16.msra.mxu0 %v754_v8  ;;  %689 = vmatprep.subr.bf16.mxu1 %v809_v2 }
  0x10   :  { %642 = vmatprep.subr.bf16.mxu0 %v755_v9 }
  0x12   :  { %690 = vmatpush3.bf16.msra.mxu1 %v766_v29 }
  0x13   :  { %643 = vmatpush3.bf16.msra.mxu0 %v756_v11  ;;  %691 = vmatprep.subr.bf16.mxu1 %v809_v2 }
  0x14   :  { %644 = vmatprep.subr.bf16.mxu0 %v757_v12 }
  0x17   :  { %645 = vmatpush3.bf16.msra.mxu0 %v758_v18 }
  0x18   :  { %646 = vmatprep.subr.bf16.mxu0 %v759_v22 }
  0x1b   :  { %647 = vmatpush3.bf16.msra.mxu0 %v760_v23 }
  0x1c   :  { %648 = vmatprep.subr.bf16.mxu0 %v761_v26 }
  0x1f   :  { %649 = vmatpush3.bf16.msra.mxu0 %v762_v28 }
  0x20   :  { %703 = vmatprep.subr.bf16.mxu0 %v809_v2 }
  0x22   :  { %228 = vmatmul.mubr.bf16.vlgmr.msra.gmra.mxu0 %v89_v31 }
  0x23   :  { %14 = vsyncpa [#allocation3], 0  ;;  %692 = vmatpush3.bf16.msra.mxu1 %v767_v30  ;;  %v768_v32 = vld [vmem:[%s1034_s3 + $0x10] sm:$0xff]   ;;  %v769_v33 = vld [vmem:[%s1034_s3 + $0x8] sm:$0xff]   ;;  %vm811_vm0 = vmmov 0   ;;  %s812_s26 = smov [#allocation2]  }
  0x24   :  { %693 = vmatprep.subr.bf16.mxu1 %v809_v2  ;;  %v770_v34 = vld [vmem:[%s1034_s3] sm:$0xff]   ;;  %699 = vmatprep.mubr.msk.bf16.mxu1 %vm811_vm0, %v809_v2  ;;  %v771_v35 = vld [vmem:[%s1036_s5 + $0x38] sm:$0xff]   ;;  %v772_v36 = vld [vmem:[%s1036_s5 + $0x30] sm:$0xff]   ;;  %s581_s27 = sshll.u32 %s812_s26, 4  ;;  %s582_s27 = int_to_ptr.vmem [resolvable:$true] %s581_s27 }
  0x25   :  { %719 = vmatprep.mubr.msk.bf16.mxu0 %vm811_vm0, %v809_v2  ;;  %704 = vmatpush3.bf16.msra.mxu0 %v771_v35  ;;  %v773_v37 = vld [vmem:[%s1036_s5 + $0x28] sm:$0xff]   ;;  %v774_v38 = vld [vmem:[%s1036_s5 + $0x20] sm:$0xff]   ;;  %v775_v39 = vld [vmem:[%s1036_s5 + $0x18] sm:$0xff]   ;;  %p792_p1 = scmp.lt.s32.totalorder %s582_s27, %s582_s27 }
  0x26   :  { %705 = vmatprep.subr.bf16.mxu0 %v809_v2  ;;  %v776_v40 = vld [vmem:[%s1036_s5 + $0x10] sm:$0xff]   ;;  %v589_v42 = vld [vmem:[%s1033_s2] ss:$0 sm:$0xff]  ;;  %v777_v50 = vld [vmem:[%s1036_s5 + $0x8] sm:$0xff]  }
  0x27   :  { %694 = vmatpush3.bf16.msra.mxu1 %v768_v32  ;;  %v778_v51 = vld [vmem:[%s1036_s5] sm:$0xff]   ;;  %v779_v52 = vld [vmem:[%s1038_s7 + $0x38] sm:$0xff]   ;;  %v780_v53 = vld [vmem:[%s1038_s7 + $0x30] sm:$0xff]  }
  0x28   :  { %695 = vmatprep.subr.bf16.mxu1 %v809_v2  ;;  %v781_v54 = vld [vmem:[%s1038_s7 + $0x28] sm:$0xff]   ;;  %v782_v55 = vld [vmem:[%s1038_s7 + $0x20] sm:$0xff]   ;;  %v783_v56 = vld [vmem:[%s1038_s7 + $0x18] sm:$0xff]  }
  0x29   :  { %706 = vmatpush3.bf16.msra.mxu0 %v772_v36  ;;  %v784_v57 = vld [vmem:[%s1038_s7 + $0x10] sm:$0xff]   ;;  %v607_v58 = vld [vmem:[%s1035_s4] ss:$0 sm:$0xff]  ;;  %v785_v3 = vld [vmem:[%s1038_s7 + $0x8] sm:$0xff]  }
  0x2a   :  { %707 = vmatprep.subr.bf16.mxu0 %v809_v2  ;;  %v786_v4 = vld [vmem:[%s1038_s7] sm:$0xff]  }
  0x2b   :  { %696 = vmatpush3.bf16.msra.mxu1 %v769_v33  ;;  %v616_v5 = vld [vmem:[%s1037_s6] ss:$0 sm:$0xff]  ;;  %s787_s6 = scalar_lea.vmem %s582_s27, 32 }
  0x2c   :  { %697 = vmatprep.subr.bf16.mxu1 %v809_v2  ;;  %p788_p0 = scmp.ne.s32.totalorder %s582_s27, %s787_s6  ;;  %p793_p2 = scmp.lt.s32.totalorder %s787_s6, %s787_s6 }
  0x2d   :  { %708 = vmatpush3.bf16.msra.mxu0 %v773_v37 }
  0x2e   :  { %709 = vmatprep.subr.bf16.mxu0 %v809_v2  ;;  %p794_p3 = por %p793_p2, %p792_p1 }
  0x2f   :  { %698 = vmatpush3.bf16.msra.mxu1 %v770_v34 }
  0x30   :  { %723 = vmatprep.subr.bf16.mxu1 %v809_v2  ;;  %p795_p4 = pnand %p794_p3, %p788_p0 }
  0x31   :  { %710 = vmatpush3.bf16.msra.mxu0 %v774_v38 }
  0x32   :  { %711 = vmatprep.subr.bf16.mxu0 %v809_v2 }
  0x35   :  { %712 = vmatpush3.bf16.msra.mxu0 %v775_v39 }
  0x36   :  { %713 = vmatprep.subr.bf16.mxu0 %v809_v2 }
  0x39   :  { %714 = vmatpush3.bf16.msra.mxu0 %v776_v40 }
  0x3a   :  { %715 = vmatprep.subr.bf16.mxu0 %v809_v2 }
  0x3d   :  { %716 = vmatpush3.bf16.msra.mxu0 %v777_v50 }
  0x3e   :  { %717 = vmatprep.subr.bf16.mxu0 %v809_v2 }
  0x41   :  { %718 = vmatpush3.bf16.msra.mxu0 %v778_v51 }
  0xe2   :  { %v650_v41 = vpop.f32.mrf.mxu0 }
  0xe4   :  { %v651_v43 = vpop.f32.mrf.mxu0 }
  0xe5   :  { %v652_v44 = vadd.f32 %v651_v43, %v650_v41 }
  0xe6   :  { %v653_v45 = vpop.f32.mrf.mxu0 }
  0xe7   :  { %v230_v46 = vadd.f32 %v652_v44, %v589_v42 }
  0xe8   :  { %v654_v47 = vpop.f32.mrf.mxu0 }
  0xe9   :  { %v235_v48 = vmax.f32 %v230_v46, 0.0 }
  0xeb   :  { %v236_v49 = vpack.c.bf16 %v235_v48, %v235_v48 }
  0xed   :  { %700 = vmatmul.mubr.bf16.vlgmr.msra.gmra.mxu1 %v236_v49 }
  0xee   :  { %739 = vmatprep.mubr.msk.bf16.mxu1 %vm811_vm0, %v809_v2  ;;  %724 = vmatpush3.bf16.msra.mxu1 %v779_v52 }
  0xef   :  { %725 = vmatprep.subr.bf16.mxu1 %v809_v2 }
  0xf2   :  { %726 = vmatpush3.bf16.msra.mxu1 %v780_v53 }
  0xf3   :  { %727 = vmatprep.subr.bf16.mxu1 %v809_v2 }
  0xf6   :  { %728 = vmatpush3.bf16.msra.mxu1 %v781_v54 }
  0xf7   :  { %729 = vmatprep.subr.bf16.mxu1 %v809_v2 }
  0xfa   :  { %730 = vmatpush3.bf16.msra.mxu1 %v782_v55 }
  0xfb   :  { %731 = vmatprep.subr.bf16.mxu1 %v809_v2 }
  0xfe   :  { %732 = vmatpush3.bf16.msra.mxu1 %v783_v56 }
  0xff   :  { %733 = vmatprep.subr.bf16.mxu1 %v809_v2 }
 0x102   :  { %734 = vmatpush3.bf16.msra.mxu1 %v784_v57 }
 0x103   :  { %735 = vmatprep.subr.bf16.mxu1 %v809_v2 }
 0x106   :  { %736 = vmatpush3.bf16.msra.mxu1 %v785_v3 }
 0x107   :  { %737 = vmatprep.subr.bf16.mxu1 %v809_v2  ;;  %v625_v2 = vld [vmem:[%s1039_s8] ss:$0 sm:$0xff] }
 0x10a   :  { %738 = vmatpush3.bf16.msra.mxu1 %v786_v4 }
 0x1ad   :  { %v342_v59 = vpop.f32.mrf.mxu1 }
 0x1ae   :  { %v343_v60 = vadd.f32 %v607_v58, %v342_v59 }
 0x1af   :  { %v701_v61 = vpop.f32.mrf.mxu1 }
 0x1b0   :  { %v348_v62 = vmax.f32 %v343_v60, 0.0 }
 0x1b1   :  { %v345_v63 = vpop.f32.mrf.mxu1 }
 0x1b2   :  { %v349_v0 = vpack.c.bf16 %v348_v62, %v348_v62 }
 0x1b3   :  { %v702_v1 = vpop.f32.mrf.mxu1 }
 0x1b4   :  { %720 = vmatmul.mubr.bf16.vlgmr.msra.gmra.mxu0 %v349_v0 }
 0x274   :  { %v455_v6 = vpop.f32.mrf.mxu0 }
 0x275   :  { %v456_v7 = vadd.f32 %v616_v5, %v455_v6 }
 0x276   :  { %v721_v8 = vpop.f32.mrf.mxu0 }
 0x277   :  { %v461_v9 = vmax.f32 %v456_v7, 0.0 }
 0x278   :  { %v458_v10 = vpop.f32.mrf.mxu0 }
 0x279   :  { %v462_v11 = vpack.c.bf16 %v461_v9, %v461_v9 }
 0x27a   :  { %v722_v12 = vpop.f32.mrf.mxu0 }
 0x27b   :  { %740 = vmatmul.mubr.bf16.vlgmr.msra.gmra.mxu1 %v462_v11 }
 0x33b   :  { %v568_v13 = vpop.f32.mrf.mxu1 }
 0x33c   :  { %v569_v14 = vadd.f32 %v625_v2, %v568_v13 }
 0x33d   :  { %v741_v15 = vpop.f32.mrf.mxu1 }
 0x33e   :  { %574 = vst [vmem:[#allocation2] sm:$0x3] %v569_v14 }
 0x33f   :  { %v571_v16 = vpop.f32.mrf.mxu1 }
 0x340   :  { %798 = shalt.err (!%p795_p4)
}
 0x341   :  { %584 = dma.vmem_to_hbm [thread:$0]  %s582_s27, 32, %s1040_s9, [#allocation3]   ;;  %v742_v17 = vpop.f32.mrf.mxu1 }
 0x342   :  { %807 = dma.done.wait [#allocation3], 32  }
 0x343   :  { %808 = vsyncadd [#allocation3], 4294967264 }
 0x344   :  { %588 = vsyncpa [#allocation3], 1 }

</bundles_post_ra>
